<compile_context>
chip_gen: v7x
topology: tpu7x:2x2x1
jax: 0.10.0
libtpu: 0.0.40
codegen_flags: <defaults>
</compile_context>

<pallas_src>
import functools
import math

import jax
import jax.numpy as jnp
from jax import lax
from jax.experimental import pallas as pl
from jax.experimental.pallas import tpu as pltpu

# ---- small BERT-like config (PubMedBERT-base structure, scaled down; lane-dense H) ----
VOCAB = 100
TYPE_VOCAB = 2
MAX_POS = 16
HIDDEN = 128            # lane-dense activations / outputs (128 lanes)
N_LAYERS = 2
N_HEADS = 4
HEAD_DIM = HIDDEN // N_HEADS
INTERMEDIATE = 256
LN_EPS = 1e-12


# ----------------------------- in-kernel helpers -----------------------------
def _erf_poly(x):
    # Abramowitz & Stegun 7.1.26 polynomial erf (|err| < 1.5e-7); divide -> EUP slot.
    p = 0.3275911
    a1, a2, a3, a4, a5 = 0.254829592, -0.284496736, 1.421413741, -1.453152027, 1.061405429
    sgn = jnp.where(x >= 0.0, 1.0, -1.0)
    ax = jnp.abs(x)
    t = pl.reciprocal(1.0 + p * ax, approx=True)
    poly = ((((a5 * t + a4) * t + a3) * t + a2) * t + a1) * t
    return sgn * (1.0 - poly * jnp.exp(-ax * ax))


def _gelu_exact(x):
    # HF BERT "gelu" (erf-based).
    return 0.5 * x * (1.0 + _erf_poly(x * 0.7071067811865476))


def _layer_norm(x, g, b):
    mean = jnp.mean(x, axis=-1, keepdims=True)
    var = jnp.mean(jnp.square(x - mean), axis=-1, keepdims=True)
    return (x - mean) * lax.rsqrt(var + LN_EPS) * g + b


# --------------------------- layer-streaming encoder kernel ---------------------------
def _encoder_kernel(x_ref, mask_ref, emb_g_ref, emb_b_ref,
                    wq_ref, bq_ref, wk_ref, bk_ref, wv_ref, bv_ref,
                    wo_ref, bo_ref, ln1g_ref, ln1b_ref,
                    w1_ref, b1_ref, w2_ref, b2_ref, ln2g_ref, ln2b_ref,
                    pw_ref, pb_ref,
                    out_ref, h_ref):
    """Grid = (batch, layer). Each step = one transformer layer for one batch element."""
    layer = pl.program_id(1)
    n_layers = pl.num_programs(1)
    S, H = h_ref.shape
    NH, _, Dh = wq_ref.shape
    scale = 1.0 / math.sqrt(Dh)
    f32, bf16 = jnp.float32, jnp.bfloat16

    # ---- embedding LayerNorm: once per batch element, at layer 0 ----
    @pl.when(layer == 0)
    def _():
        h_ref[...] = _layer_norm(x_ref[...], emb_g_ref[...], emb_b_ref[...])

    h = h_ref[...]                                    # (S, H) f32 residual stream
    h_bf = h.astype(bf16)

    # ---- head-batched Q/K/V projections: no per-head loop, no lane slices ----
    xb = jnp.broadcast_to(h_bf[None], (NH, S, H))     # share x across the head batch axis
    q = jnp.einsum("hsk,hkd->hsd", xb, wq_ref[...], preferred_element_type=f32) + bq_ref[...]
    k = jnp.einsum("hsk,hkd->hsd", xb, wk_ref[...], preferred_element_type=f32) + bk_ref[...]
    v = jnp.einsum("hsk,hkd->hsd", xb, wv_ref[...], preferred_element_type=f32) + bv_ref[...]

    # ---- attention: two batched einsums over all heads at once ----
    s = jnp.einsum("hqd,hkd->hqk", q.astype(bf16), k.astype(bf16),
                   preferred_element_type=f32) * scale
    s = s + mask_ref[...][None, :, :]                 # mask pre-broadcast to (S,S) outside
    s = s - jnp.max(s, axis=-1, keepdims=True)
    p = jnp.exp(s)
    p = p / jnp.sum(p, axis=-1, keepdims=True)        # exact divide (accuracy)
    ctx = jnp.einsum("hqk,hkd->hqd", p.astype(bf16), v.astype(bf16),
                     preferred_element_type=f32)      # (NH, S, Dh)

    # ---- head merge folded into the output projection (no concatenate) ----
    attn = jnp.sum(
        jnp.einsum("hsd,hdk->hsk", ctx.astype(bf16), wo_ref[...],
                   preferred_element_type=f32),
        axis=0) + bo_ref[...]
    h = _layer_norm(attn + h, ln1g_ref[...], ln1b_ref[...])

    # ---- feed-forward ----
    ff = _gelu_exact(jnp.dot(h.astype(bf16), w1_ref[...],
                             preferred_element_type=f32) + b1_ref[...])
    ff = jnp.dot(ff.astype(bf16), w2_ref[...], preferred_element_type=f32) + b2_ref[...]
    h = _layer_norm(ff + h, ln2g_ref[...], ln2b_ref[...])
    h_ref[...] = h

    # ---- pooler epilogue at the last layer: tanh(W_p @ CLS + b_p) ----
    @pl.when(layer == n_layers - 1)
    def _():
        cls = h[0:1, :]                               # CLS = row 0 of this batch's slab
        out_ref[...] = jnp.tanh(
            jnp.dot(cls.astype(bf16), pw_ref[...], preferred_element_type=f32)
            + pb_ref[...])
    # TODO(synk): output_way == 'cls' would instead return `cls` (last_hidden_state[:, 0]).


# ----------------------------- parameters (synthetic) -----------------------------
def init_params(key):
    def normal(k, shape, dtype=jnp.float32):
        return (0.02 * jax.random.normal(k, shape, dtype=jnp.float32)).astype(dtype)

    keys = iter(jax.random.split(key, 32))
    L, H, I, NH, Dh = N_LAYERS, HIDDEN, INTERMEDIATE, N_HEADS, HEAD_DIM
    bf16 = jnp.bfloat16
    return {
        "word_emb": normal(next(keys), (VOCAB, H)),
        "pos_emb": normal(next(keys), (MAX_POS, H)),
        "type_emb": normal(next(keys), (TYPE_VOCAB, H)),
        "emb_ln_g": jnp.ones((1, H), jnp.float32),
        "emb_ln_b": jnp.zeros((1, H), jnp.float32),
        # Head-batched projection weights (layer, head, H, Dh) in bf16 so the kernel
        # needs no lane-offset head slices; for real PubMedBERT these are reshapes of
        # the dense W_q / W_k / W_v / W_o matrices done once at load time.
        "wq": normal(next(keys), (L, NH, H, Dh), bf16),
        "bq": jnp.zeros((L, NH, 1, Dh), jnp.float32),
        "wk": normal(next(keys), (L, NH, H, Dh), bf16),
        "bk": jnp.zeros((L, NH, 1, Dh), jnp.float32),
        "wv": normal(next(keys), (L, NH, H, Dh), bf16),
        "bv": jnp.zeros((L, NH, 1, Dh), jnp.float32),
        "wo": normal(next(keys), (L, NH, Dh, H), bf16),
        "bo": jnp.zeros((L, 1, H), jnp.float32),
        "ln1_g": jnp.ones((L, 1, H), jnp.float32),
        "ln1_b": jnp.zeros((L, 1, H), jnp.float32),
        "w1": normal(next(keys), (L, H, I), bf16),
        "b1": jnp.zeros((L, 1, I), jnp.float32),
        "w2": normal(next(keys), (L, I, H), bf16),
        "b2": jnp.zeros((L, 1, H), jnp.float32),
        "ln2_g": jnp.ones((L, 1, H), jnp.float32),
        "ln2_b": jnp.zeros((L, 1, H), jnp.float32),
        "pooler_w": normal(next(keys), (H, H), bf16),
        "pooler_b": jnp.zeros((1, H), jnp.float32),
    }


# --------------------------------- forward pass ---------------------------------
def neural_network_forward(params, input_ids, attention_mask, token_type_ids):
    """Equivalent of NeuralNetwork.forward with output_way == 'pooler'."""
    B, S = input_ids.shape
    H, L, NH, Dh, I = HIDDEN, N_LAYERS, N_HEADS, HEAD_DIM, INTERMEDIATE

    # Embedding gathers are data-dependent (vocab / position / type lookups): plain JAX glue.
    x = (params["word_emb"][input_ids]
         + params["pos_emb"][jnp.arange(S)][None, :, :]
         + params["type_emb"][token_type_ids]).astype(jnp.float32)        # (B, S, H)

    # HF-style extended additive attention mask, pre-broadcast ONCE to (B, S, S).
    add_mask = jnp.broadcast_to(
        ((1.0 - attention_mask.astype(jnp.float32)) * -1e9)[:, None, :], (B, S, S))

    # Advisory cost estimate for XLA scheduling around the custom call.
    flops_layer = 2 * S * H * H * 4 + 4 * S * S * H + 4 * S * H * I
    flops = B * L * flops_layer + B * 2 * H * H
    transcendentals = B * L * (NH * S * S + S * I) + B * H
    bytes_accessed = int(sum(int(v.size) * v.dtype.itemsize for v in params.values())
                         + x.size * 4 + add_mask.size * 4 + B * H * 4)

    def layer_spec(shape):
        # Streams layer `l`'s weight tile HBM->VMEM (double-buffered by the pipeline).
        return pl.BlockSpec((None,) + shape, lambda b, l: (l,) + (0,) * len(shape))

    def shared_spec(shape):
        return pl.BlockSpec(shape, lambda b, l: (0,) * len(shape))

    grid_spec = pltpu.PrefetchScalarGridSpec(
        num_scalar_prefetch=0,
        grid=(B, L),                                   # batch parallel, layers sequential
        in_specs=[
            pl.BlockSpec((None, S, H), lambda b, l: (b, 0, 0)),     # embeddings
            pl.BlockSpec((None, S, S), lambda b, l: (b, 0, 0)),     # additive mask
            shared_spec((1, H)), shared_spec((1, H)),               # emb LN g/b
            layer_spec((NH, H, Dh)), layer_spec((NH, 1, Dh)),       # wq, bq
            layer_spec((NH, H, Dh)), layer_spec((NH, 1, Dh)),       # wk, bk
            layer_spec((NH, H, Dh)), layer_spec((NH, 1, Dh)),       # wv, bv
            layer_spec((NH, Dh, H)), layer_spec((1, H)),            # wo, bo
            layer_spec((1, H)), layer_spec((1, H)),                 # ln1 g/b
            layer_spec((H, I)), layer_spec((1, I)),                 # w1, b1
            layer_spec((I, H)), layer_spec((1, H)),                 # w2, b2
            layer_spec((1, H)), layer_spec((1, H)),                 # ln2 g/b
            shared_spec((H, H)), shared_spec((1, H)),               # pooler w/b
        ],
        out_specs=pl.BlockSpec((None, 1, H), lambda b, l: (b, 0, 0)),  # resident across l
        scratch_shapes=[pltpu.VMEM((S, H), jnp.float32)],              # residual stream
    )

    out = pl.pallas_call(
        _encoder_kernel,
        out_shape=jax.ShapeDtypeStruct((B, 1, H), jnp.float32),
        grid_spec=grid_spec,
        compiler_params=pltpu.CompilerParams(
            dimension_semantics=("parallel", "arbitrary"),
            vmem_limit_bytes=32 * 1024 * 1024),
        cost_estimate=pl.CostEstimate(flops=int(flops),
                                      transcendentals=int(transcendentals),
                                      bytes_accessed=bytes_accessed),
    )(x, add_mask,
      params["emb_ln_g"], params["emb_ln_b"],
      params["wq"], params["bq"], params["wk"], params["bk"],
      params["wv"], params["bv"], params["wo"], params["bo"],
      params["ln1_g"], params["ln1_b"],
      params["w1"], params["b1"], params["w2"], params["b2"],
      params["ln2_g"], params["ln2_b"],
      params["pooler_w"], params["pooler_b"])
    return out.reshape(B, H)


if __name__ == "__main__":
    B, S = 2, 8
    key = jax.random.PRNGKey(0)
    k_param, k_ids = jax.random.split(key)

    params = init_params(k_param)
    input_ids = jax.random.randint(k_ids, (B, S), 0, VOCAB, dtype=jnp.int32)
    attention_mask = jnp.array(
        [[1, 1, 1, 1, 1, 1, 1, 1],
         [1, 1, 1, 1, 1, 1, 0, 0]], dtype=jnp.int32)          # batch 1 has 2 pad tokens
    token_type_ids = jnp.array(
        [[0, 0, 0, 0, 1, 1, 1, 1],
         [0, 0, 0, 1, 1, 1, 0, 0]], dtype=jnp.int32)

    fwd = jax.jit(functools.partial(neural_network_forward, params))
    out = jax.block_until_ready(fwd(input_ids, attention_mask, token_type_ids))
    assert out.shape == (B, HIDDEN) and out.dtype == jnp.float32
    assert bool(jnp.all(jnp.isfinite(out)))
    print("KERNEL_OK")
</pallas_src>

<mosaic_0001>
module attributes {stable_mosaic.version = 11 : i64} {
  func.func @_encoder_kernel(%arg0: i32, %arg1: i32, %arg2: memref<1x8x128xf32, #tpu.memory_space<vmem>>, %arg3: memref<1x8x8xf32, #tpu.memory_space<vmem>>, %arg4: memref<1x128xf32, #tpu.memory_space<vmem>>, %arg5: memref<1x128xf32, #tpu.memory_space<vmem>>, %arg6: memref<1x4x128x32xbf16, #tpu.memory_space<vmem>>, %arg7: memref<1x4x1x32xf32, #tpu.memory_space<vmem>>, %arg8: memref<1x4x128x32xbf16, #tpu.memory_space<vmem>>, %arg9: memref<1x4x1x32xf32, #tpu.memory_space<vmem>>, %arg10: memref<1x4x128x32xbf16, #tpu.memory_space<vmem>>, %arg11: memref<1x4x1x32xf32, #tpu.memory_space<vmem>>, %arg12: memref<1x4x32x128xbf16, #tpu.memory_space<vmem>>, %arg13: memref<1x1x128xf32, #tpu.memory_space<vmem>>, %arg14: memref<1x1x128xf32, #tpu.memory_space<vmem>>, %arg15: memref<1x1x128xf32, #tpu.memory_space<vmem>>, %arg16: memref<1x128x256xbf16, #tpu.memory_space<vmem>>, %arg17: memref<1x1x256xf32, #tpu.memory_space<vmem>>, %arg18: memref<1x256x128xbf16, #tpu.memory_space<vmem>>, %arg19: memref<1x1x128xf32, #tpu.memory_space<vmem>>, %arg20: memref<1x1x128xf32, #tpu.memory_space<vmem>>, %arg21: memref<1x1x128xf32, #tpu.memory_space<vmem>>, %arg22: memref<128x128xbf16, #tpu.memory_space<vmem>>, %arg23: memref<1x128xf32, #tpu.memory_space<vmem>>, %arg24: memref<1x1x128xf32, #tpu.memory_space<vmem>>, %arg25: memref<8x128xf32, #tpu.memory_space<vmem>>) attributes {dimension_semantics = [#tpu.dimension_semantics<parallel>, #tpu.dimension_semantics<arbitrary>], iteration_bounds = array<i64: 2, 2>, scalar_prefetch = 0 : i64, scratch_operands = 1 : i64, tpu.core_type = #tpu.core_type<tc>, window_params = [{transform_indices = @transform_0, window_bounds = array<i64: 1, 8, 128>}, {transform_indices = @transform_1, window_bounds = array<i64: 1, 8, 8>}, {pipeline_mode = #tpu.pipeline_mode<synchronous>, transform_indices = @transform_2, window_bounds = array<i64: 1, 128>}, {pipeline_mode = #tpu.pipeline_mode<synchronous>, transform_indices = @transform_3, window_bounds = array<i64: 1, 128>}, {transform_indices = @transform_4, window_bounds = array<i64: 1, 4, 128, 32>}, {transform_indices = @transform_5, window_bounds = array<i64: 1, 4, 1, 32>}, {transform_indices = @transform_6, window_bounds = array<i64: 1, 4, 128, 32>}, {transform_indices = @transform_7, window_bounds = array<i64: 1, 4, 1, 32>}, {transform_indices = @transform_8, window_bounds = array<i64: 1, 4, 128, 32>}, {transform_indices = @transform_9, window_bounds = array<i64: 1, 4, 1, 32>}, {transform_indices = @transform_10, window_bounds = array<i64: 1, 4, 32, 128>}, {transform_indices = @transform_11, window_bounds = array<i64: 1, 1, 128>}, {transform_indices = @transform_12, window_bounds = array<i64: 1, 1, 128>}, {transform_indices = @transform_13, window_bounds = array<i64: 1, 1, 128>}, {transform_indices = @transform_14, window_bounds = array<i64: 1, 128, 256>}, {transform_indices = @transform_15, window_bounds = array<i64: 1, 1, 256>}, {transform_indices = @transform_16, window_bounds = array<i64: 1, 256, 128>}, {transform_indices = @transform_17, window_bounds = array<i64: 1, 1, 128>}, {transform_indices = @transform_18, window_bounds = array<i64: 1, 1, 128>}, {transform_indices = @transform_19, window_bounds = array<i64: 1, 1, 128>}, {pipeline_mode = #tpu.pipeline_mode<synchronous>, transform_indices = @transform_20, window_bounds = array<i64: 128, 128>}, {pipeline_mode = #tpu.pipeline_mode<synchronous>, transform_indices = @transform_21, window_bounds = array<i64: 1, 128>}, {transform_indices = @transform_22, window_bounds = array<i64: 1, 1, 128>}]} {
    %c0_i32 = arith.constant 0 : i32
    %0 = arith.cmpi eq, %arg1, %c0_i32 : i32
    %1 = arith.extui %0 : i1 to i32
    %c0_i32_0 = arith.constant 0 : i32
    %2 = arith.cmpi ne, %1, %c0_i32_0 : i32
    scf.if %2 {
      %c0_99 = arith.constant 0 : index
      %c0_100 = arith.constant 0 : index
      %c0_101 = arith.constant 0 : index
      %174 = vector.load %arg2[%c0_99, %c0_100, %c0_101] : memref<1x8x128xf32, #tpu.memory_space<vmem>>, vector<1x8x128xf32>
      %175 = vector.shape_cast %174 : vector<1x8x128xf32> to vector<8x128xf32>
      %c0_102 = arith.constant 0 : index
      %c0_103 = arith.constant 0 : index
      %176 = vector.load %arg4[%c0_102, %c0_103] : memref<1x128xf32, #tpu.memory_space<vmem>>, vector<1x128xf32>
      %c0_104 = arith.constant 0 : index
      %c0_105 = arith.constant 0 : index
      %177 = vector.load %arg5[%c0_104, %c0_105] : memref<1x128xf32, #tpu.memory_space<vmem>>, vector<1x128xf32>
      %cst_106 = arith.constant dense<0.000000e+00> : vector<8xf32>
      %178 = vector.multi_reduction <add>, %175, %cst_106 [1] : vector<8x128xf32> to vector<8xf32>
      %179 = vector.shape_cast %178 : vector<8xf32> to vector<8x1xf32>
      %cst_107 = arith.constant 1.280000e+02 : f32
      %180 = vector.broadcast %cst_107 : f32 to vector<8x1xf32>
      %181 = arith.divf %179, %180 : vector<8x1xf32>
      %182 = vector.broadcast %181 : vector<8x1xf32> to vector<8x128xf32>
      %183 = arith.subf %175, %182 : vector<8x128xf32>
      %184 = arith.mulf %183, %183 : vector<8x128xf32>
      %cst_108 = arith.constant dense<0.000000e+00> : vector<8xf32>
      %185 = vector.multi_reduction <add>, %184, %cst_108 [1] : vector<8x128xf32> to vector<8xf32>
      %186 = vector.shape_cast %185 : vector<8xf32> to vector<8x1xf32>
      %cst_109 = arith.constant 1.280000e+02 : f32
      %187 = vector.broadcast %cst_109 : f32 to vector<8x1xf32>
      %188 = arith.divf %186, %187 : vector<8x1xf32>
      %189 = vector.broadcast %181 : vector<8x1xf32> to vector<8x128xf32>
      %190 = arith.subf %175, %189 : vector<8x128xf32>
      %cst_110 = arith.constant 9.99999996E-13 : f32
      %191 = vector.broadcast %cst_110 : f32 to vector<8x1xf32>
      %192 = arith.addf %188, %191 : vector<8x1xf32>
      %193 = math.rsqrt %192 : vector<8x1xf32>
      %194 = vector.broadcast %193 : vector<8x1xf32> to vector<8x128xf32>
      %195 = arith.mulf %190, %194 : vector<8x128xf32>
      %196 = vector.broadcast %176 : vector<1x128xf32> to vector<8x128xf32>
      %197 = arith.mulf %195, %196 : vector<8x128xf32>
      %198 = vector.broadcast %177 : vector<1x128xf32> to vector<8x128xf32>
      %199 = arith.addf %197, %198 : vector<8x128xf32>
      %c0_111 = arith.constant 0 : index
      %c0_112 = arith.constant 0 : index
      %200 = vector.load %arg25[%c0_111, %c0_112] : memref<8x128xf32, #tpu.memory_space<vmem>>, vector<8x128xf32>
      tpu.vector_store %arg25[%c0_111, %c0_112], %199 {strides = array<i32>} : memref<8x128xf32, #tpu.memory_space<vmem>>, vector<8x128xf32>,
    } else {
    }
    %c0 = arith.constant 0 : index
    %c0_1 = arith.constant 0 : index
    %3 = vector.load %arg25[%c0, %c0_1] : memref<8x128xf32, #tpu.memory_space<vmem>>, vector<8x128xf32>
    %4 = arith.truncf %3 : vector<8x128xf32> to vector<8x128xbf16>
    %5 = vector.shape_cast %4 : vector<8x128xbf16> to vector<1x8x128xbf16>
    %6 = vector.shape_cast %5 : vector<1x8x128xbf16> to vector<1x8x128xbf16>
    %7 = vector.broadcast %6 : vector<1x8x128xbf16> to vector<4x8x128xbf16>
    %c0_2 = arith.constant 0 : index
    %c0_3 = arith.constant 0 : index
    %c0_4 = arith.constant 0 : index
    %c0_5 = arith.constant 0 : index
    %8 = vector.load %arg6[%c0_2, %c0_3, %c0_4, %c0_5] : memref<1x4x128x32xbf16, #tpu.memory_space<vmem>>, vector<1x4x128x32xbf16>
    %9 = vector.shape_cast %8 : vector<1x4x128x32xbf16> to vector<4x128x32xbf16>
    "tpu.trace_start"() <{level = 10 : i32, message = "hsk,hkd->hsd"}> : () -> ()
    %cst = arith.constant dense<0.000000e+00> : vector<4x8x32xf32>
    %10 = tpu.matmul %7, %9, %cst {dimension_numbers = #tpu.dot_dimension_numbers<[2], [1], [1], [2], [0, 0, 0, 1, 1, 2], [0], [0]>} : vector<4x8x128xbf16>, vector<4x128x32xbf16>, vector<4x8x32xf32> -> vector<4x8x32xf32>
    "tpu.trace_stop"() : () -> ()
    %c0_6 = arith.constant 0 : index
    %c0_7 = arith.constant 0 : index
    %c0_8 = arith.constant 0 : index
    %c0_9 = arith.constant 0 : index
    %11 = vector.load %arg7[%c0_6, %c0_7, %c0_8, %c0_9] : memref<1x4x1x32xf32, #tpu.memory_space<vmem>>, vector<1x4x1x32xf32>
    %12 = vector.shape_cast %11 : vector<1x4x1x32xf32> to vector<4x1x32xf32>
    %13 = vector.broadcast %12 : vector<4x1x32xf32> to vector<4x8x32xf32>
    %14 = arith.addf %10, %13 : vector<4x8x32xf32>
    %c0_10 = arith.constant 0 : index
    %c0_11 = arith.constant 0 : index
    %c0_12 = arith.constant 0 : index
    %c0_13 = arith.constant 0 : index
    %15 = vector.load %arg8[%c0_10, %c0_11, %c0_12, %c0_13] : memref<1x4x128x32xbf16, #tpu.memory_space<vmem>>, vector<1x4x128x32xbf16>
    %16 = vector.shape_cast %15 : vector<1x4x128x32xbf16> to vector<4x128x32xbf16>
    "tpu.trace_start"() <{level = 10 : i32, message = "hsk,hkd->hsd"}> : () -> ()
    %cst_14 = arith.constant dense<0.000000e+00> : vector<4x8x32xf32>
    %17 = tpu.matmul %7, %16, %cst_14 {dimension_numbers = #tpu.dot_dimension_numbers<[2], [1], [1], [2], [0, 0, 0, 1, 1, 2], [0], [0]>} : vector<4x8x128xbf16>, vector<4x128x32xbf16>, vector<4x8x32xf32> -> vector<4x8x32xf32>
    "tpu.trace_stop"() : () -> ()
    %c0_15 = arith.constant 0 : index
    %c0_16 = arith.constant 0 : index
    %c0_17 = arith.constant 0 : index
    %c0_18 = arith.constant 0 : index
    %18 = vector.load %arg9[%c0_15, %c0_16, %c0_17, %c0_18] : memref<1x4x1x32xf32, #tpu.memory_space<vmem>>, vector<1x4x1x32xf32>
    %19 = vector.shape_cast %18 : vector<1x4x1x32xf32> to vector<4x1x32xf32>
    %20 = vector.broadcast %19 : vector<4x1x32xf32> to vector<4x8x32xf32>
    %21 = arith.addf %17, %20 : vector<4x8x32xf32>
    %c0_19 = arith.constant 0 : index
    %c0_20 = arith.constant 0 : index
    %c0_21 = arith.constant 0 : index
    %c0_22 = arith.constant 0 : index
    %22 = vector.load %arg10[%c0_19, %c0_20, %c0_21, %c0_22] : memref<1x4x128x32xbf16, #tpu.memory_space<vmem>>, vector<1x4x128x32xbf16>
    %23 = vector.shape_cast %22 : vector<1x4x128x32xbf16> to vector<4x128x32xbf16>
    "tpu.trace_start"() <{level = 10 : i32, message = "hsk,hkd->hsd"}> : () -> ()
    %cst_23 = arith.constant dense<0.000000e+00> : vector<4x8x32xf32>
    %24 = tpu.matmul %7, %23, %cst_23 {dimension_numbers = #tpu.dot_dimension_numbers<[2], [1], [1], [2], [0, 0, 0, 1, 1, 2], [0], [0]>} : vector<4x8x128xbf16>, vector<4x128x32xbf16>, vector<4x8x32xf32> -> vector<4x8x32xf32>
    "tpu.trace_stop"() : () -> ()
    %c0_24 = arith.constant 0 : index
    %c0_25 = arith.constant 0 : index
    %c0_26 = arith.constant 0 : index
    %c0_27 = arith.constant 0 : index
    %25 = vector.load %arg11[%c0_24, %c0_25, %c0_26, %c0_27] : memref<1x4x1x32xf32, #tpu.memory_space<vmem>>, vector<1x4x1x32xf32>
    %26 = vector.shape_cast %25 : vector<1x4x1x32xf32> to vector<4x1x32xf32>
    %27 = vector.broadcast %26 : vector<4x1x32xf32> to vector<4x8x32xf32>
    %28 = arith.addf %24, %27 : vector<4x8x32xf32>
    %29 = arith.truncf %14 : vector<4x8x32xf32> to vector<4x8x32xbf16>
    %30 = arith.truncf %21 : vector<4x8x32xf32> to vector<4x8x32xbf16>
    "tpu.trace_start"() <{level = 10 : i32, message = "hqd,hkd->hqk"}> : () -> ()
    %cst_28 = arith.constant dense<0.000000e+00> : vector<4x8x8xf32>
    %31 = tpu.matmul %29, %30, %cst_28 {dimension_numbers = #tpu.dot_dimension_numbers<[2], [2], [1], [1], [0, 0, 0, 1, 1, 1], [0], [0]>} : vector<4x8x32xbf16>, vector<4x8x32xbf16>, vector<4x8x8xf32> -> vector<4x8x8xf32>
    "tpu.trace_stop"() : () -> ()
    %cst_29 = arith.constant 0.176776692 : f32
    %32 = vector.broadcast %cst_29 : f32 to vector<4x8x8xf32>
    %33 = arith.mulf %31, %32 : vector<4x8x8xf32>
    %c0_30 = arith.constant 0 : index
    %c0_31 = arith.constant 0 : index
    %c0_32 = arith.constant 0 : index
    %34 = vector.load %arg3[%c0_30, %c0_31, %c0_32] : memref<1x8x8xf32, #tpu.memory_space<vmem>>, vector<1x8x8xf32>
    %35 = vector.shape_cast %34 : vector<1x8x8xf32> to vector<8x8xf32>
    %36 = vector.shape_cast %35 : vector<8x8xf32> to vector<1x8x8xf32>
    %37 = vector.broadcast %36 : vector<1x8x8xf32> to vector<4x8x8xf32>
    %38 = arith.addf %33, %37 : vector<4x8x8xf32>
    %cst_33 = arith.constant dense<0xFF800000> : vector<4x8xf32>
    %39 = vector.multi_reduction <maximumf>, %38, %cst_33 [2] : vector<4x8x8xf32> to vector<4x8xf32>
    %40 = vector.shape_cast %39 : vector<4x8xf32> to vector<4x8x1xf32>
    %41 = vector.broadcast %40 : vector<4x8x1xf32> to vector<4x8x8xf32>
    %42 = arith.subf %38, %41 : vector<4x8x8xf32>
    %43 = math.exp %42 : vector<4x8x8xf32>
    %cst_34 = arith.constant dense<0.000000e+00> : vector<4x8xf32>
    %44 = vector.multi_reduction <add>, %43, %cst_34 [2] : vector<4x8x8xf32> to vector<4x8xf32>
    %45 = vector.shape_cast %44 : vector<4x8xf32> to vector<4x8x1xf32>
    %46 = vector.broadcast %45 : vector<4x8x1xf32> to vector<4x8x8xf32>
    %47 = arith.divf %43, %46 : vector<4x8x8xf32>
    %48 = arith.truncf %47 : vector<4x8x8xf32> to vector<4x8x8xbf16>
    %49 = arith.truncf %28 : vector<4x8x32xf32> to vector<4x8x32xbf16>
    "tpu.trace_start"() <{level = 10 : i32, message = "hqk,hkd->hqd"}> : () -> ()
    %cst_35 = arith.constant dense<0.000000e+00> : vector<4x8x32xf32>
    %50 = tpu.matmul %48, %49, %cst_35 {dimension_numbers = #tpu.dot_dimension_numbers<[2], [1], [1], [2], [0, 0, 0, 1, 1, 2], [0], [0]>} : vector<4x8x8xbf16>, vector<4x8x32xbf16>, vector<4x8x32xf32> -> vector<4x8x32xf32>
    "tpu.trace_stop"() : () -> ()
    %51 = arith.truncf %50 : vector<4x8x32xf32> to vector<4x8x32xbf16>
    %c0_36 = arith.constant 0 : index
    %c0_37 = arith.constant 0 : index
    %c0_38 = arith.constant 0 : index
    %c0_39 = arith.constant 0 : index
    %52 = vector.load %arg12[%c0_36, %c0_37, %c0_38, %c0_39] : memref<1x4x32x128xbf16, #tpu.memory_space<vmem>>, vector<1x4x32x128xbf16>
    %53 = vector.shape_cast %52 : vector<1x4x32x128xbf16> to vector<4x32x128xbf16>
    "tpu.trace_start"() <{level = 10 : i32, message = "hsd,hdk->hsk"}> : () -> ()
    %cst_40 = arith.constant dense<0.000000e+00> : vector<4x8x128xf32>
    %54 = tpu.matmul %51, %53, %cst_40 {dimension_numbers = #tpu.dot_dimension_numbers<[2], [1], [1], [2], [0, 0, 0, 1, 1, 2], [0], [0]>} : vector<4x8x32xbf16>, vector<4x32x128xbf16>, vector<4x8x128xf32> -> vector<4x8x128xf32>
    "tpu.trace_stop"() : () -> ()
    %cst_41 = arith.constant dense<0.000000e+00> : vector<8x128xf32>
    %55 = vector.multi_reduction <add>, %54, %cst_41 [0] : vector<4x8x128xf32> to vector<8x128xf32>
    %c0_42 = arith.constant 0 : index
    %c0_43 = arith.constant 0 : index
    %c0_44 = arith.constant 0 : index
    %56 = vector.load %arg13[%c0_42, %c0_43, %c0_44] : memref<1x1x128xf32, #tpu.memory_space<vmem>>, vector<1x1x128xf32>
    %57 = vector.shape_cast %56 : vector<1x1x128xf32> to vector<1x128xf32>
    %58 = vector.broadcast %57 : vector<1x128xf32> to vector<8x128xf32>
    %59 = arith.addf %55, %58 : vector<8x128xf32>
    %60 = arith.addf %59, %3 : vector<8x128xf32>
    %c0_45 = arith.constant 0 : index
    %c0_46 = arith.constant 0 : index
    %c0_47 = arith.constant 0 : index
    %61 = vector.load %arg14[%c0_45, %c0_46, %c0_47] : memref<1x1x128xf32, #tpu.memory_space<vmem>>, vector<1x1x128xf32>
    %62 = vector.shape_cast %61 : vector<1x1x128xf32> to vector<1x128xf32>
    %c0_48 = arith.constant 0 : index
    %c0_49 = arith.constant 0 : index
    %c0_50 = arith.constant 0 : index
    %63 = vector.load %arg15[%c0_48, %c0_49, %c0_50] : memref<1x1x128xf32, #tpu.memory_space<vmem>>, vector<1x1x128xf32>
    %64 = vector.shape_cast %63 : vector<1x1x128xf32> to vector<1x128xf32>
    %cst_51 = arith.constant dense<0.000000e+00> : vector<8xf32>
    %65 = vector.multi_reduction <add>, %60, %cst_51 [1] : vector<8x128xf32> to vector<8xf32>
    %66 = vector.shape_cast %65 : vector<8xf32> to vector<8x1xf32>
    %cst_52 = arith.constant 1.280000e+02 : f32
    %67 = vector.broadcast %cst_52 : f32 to vector<8x1xf32>
    %68 = arith.divf %66, %67 : vector<8x1xf32>
    %69 = vector.broadcast %68 : vector<8x1xf32> to vector<8x128xf32>
    %70 = arith.subf %60, %69 : vector<8x128xf32>
    %71 = arith.mulf %70, %70 : vector<8x128xf32>
    %cst_53 = arith.constant dense<0.000000e+00> : vector<8xf32>
    %72 = vector.multi_reduction <add>, %71, %cst_53 [1] : vector<8x128xf32> to vector<8xf32>
    %73 = vector.shape_cast %72 : vector<8xf32> to vector<8x1xf32>
    %cst_54 = arith.constant 1.280000e+02 : f32
    %74 = vector.broadcast %cst_54 : f32 to vector<8x1xf32>
    %75 = arith.divf %73, %74 : vector<8x1xf32>
    %76 = vector.broadcast %68 : vector<8x1xf32> to vector<8x128xf32>
    %77 = arith.subf %60, %76 : vector<8x128xf32>
    %cst_55 = arith.constant 9.99999996E-13 : f32
    %78 = vector.broadcast %cst_55 : f32 to vector<8x1xf32>
    %79 = arith.addf %75, %78 : vector<8x1xf32>
    %80 = math.rsqrt %79 : vector<8x1xf32>
    %81 = vector.broadcast %80 : vector<8x1xf32> to vector<8x128xf32>
    %82 = arith.mulf %77, %81 : vector<8x128xf32>
    %83 = vector.broadcast %62 : vector<1x128xf32> to vector<8x128xf32>
    %84 = arith.mulf %82, %83 : vector<8x128xf32>
    %85 = vector.broadcast %64 : vector<1x128xf32> to vector<8x128xf32>
    %86 = arith.addf %84, %85 : vector<8x128xf32>
    %87 = arith.truncf %86 : vector<8x128xf32> to vector<8x128xbf16>
    %c0_56 = arith.constant 0 : index
    %c0_57 = arith.constant 0 : index
    %c0_58 = arith.constant 0 : index
    %88 = vector.load %arg16[%c0_56, %c0_57, %c0_58] : memref<1x128x256xbf16, #tpu.memory_space<vmem>>, vector<1x128x256xbf16>
    %89 = vector.shape_cast %88 : vector<1x128x256xbf16> to vector<128x256xbf16>
    %cst_59 = arith.constant dense<0.000000e+00> : vector<8x256xf32>
    %90 = tpu.matmul %87, %89, %cst_59 {dimension_numbers = #tpu.dot_dimension_numbers<[1], [0], [0], [1], [0, 0, 1, 1], [], []>} : vector<8x128xbf16>, vector<128x256xbf16>, vector<8x256xf32> -> vector<8x256xf32>
    %c0_60 = arith.constant 0 : index
    %c0_61 = arith.constant 0 : index
    %c0_62 = arith.constant 0 : index
    %91 = vector.load %arg17[%c0_60, %c0_61, %c0_62] : memref<1x1x256xf32, #tpu.memory_space<vmem>>, vector<1x1x256xf32>
    %92 = vector.shape_cast %91 : vector<1x1x256xf32> to vector<1x256xf32>
    %93 = vector.broadcast %92 : vector<1x256xf32> to vector<8x256xf32>
    %94 = arith.addf %90, %93 : vector<8x256xf32>
    %cst_63 = arith.constant 5.000000e-01 : f32
    %95 = vector.broadcast %cst_63 : f32 to vector<8x256xf32>
    %96 = arith.mulf %95, %94 : vector<8x256xf32>
    %cst_64 = arith.constant 0.707106769 : f32
    %97 = vector.broadcast %cst_64 : f32 to vector<8x256xf32>
    %98 = arith.mulf %94, %97 : vector<8x256xf32>
    %cst_65 = arith.constant 0.000000e+00 : f32
    %99 = vector.broadcast %cst_65 : f32 to vector<8x256xf32>
    %100 = arith.cmpf oge, %98, %99 : vector<8x256xf32>
    %cst_66 = arith.constant 1.000000e+00 : f32
    %cst_67 = arith.constant -1.000000e+00 : f32
    %101 = vector.broadcast %cst_66 : f32 to vector<8x256xf32>
    %102 = vector.broadcast %cst_67 : f32 to vector<8x256xf32>
    %103 = arith.select %100, %101, %102 : vector<8x256xi1>, vector<8x256xf32>
    %104 = math.absf %98 : vector<8x256xf32>
    %cst_68 = arith.constant 0.327591091 : f32
    %105 = vector.broadcast %cst_68 : f32 to vector<8x256xf32>
    %106 = arith.mulf %105, %104 : vector<8x256xf32>
    %cst_69 = arith.constant 1.000000e+00 : f32
    %107 = vector.broadcast %cst_69 : f32 to vector<8x256xf32>
    %108 = arith.addf %107, %106 : vector<8x256xf32>
    %109 = tpu.reciprocal %108 {approx = true} : vector<8x256xf32> -> vector<8x256xf32>
    %cst_70 = arith.constant 1.06140542 : f32
    %110 = vector.broadcast %cst_70 : f32 to vector<8x256xf32>
    %111 = arith.mulf %110, %109 : vector<8x256xf32>
    %cst_71 = arith.constant -1.45315206 : f32
    %112 = vector.broadcast %cst_71 : f32 to vector<8x256xf32>
    %113 = arith.addf %111, %112 : vector<8x256xf32>
    %114 = arith.mulf %113, %109 : vector<8x256xf32>
    %cst_72 = arith.constant 1.42141378 : f32
    %115 = vector.broadcast %cst_72 : f32 to vector<8x256xf32>
    %116 = arith.addf %114, %115 : vector<8x256xf32>
    %117 = arith.mulf %116, %109 : vector<8x256xf32>
    %cst_73 = arith.constant -0.284496725 : f32
    %118 = vector.broadcast %cst_73 : f32 to vector<8x256xf32>
    %119 = arith.addf %117, %118 : vector<8x256xf32>
    %120 = arith.mulf %119, %109 : vector<8x256xf32>
    %cst_74 = arith.constant 0.254829586 : f32
    %121 = vector.broadcast %cst_74 : f32 to vector<8x256xf32>
    %122 = arith.addf %120, %121 : vector<8x256xf32>
    %123 = arith.mulf %122, %109 : vector<8x256xf32>
    %cst_75 = arith.constant 0.000000e+00 : f32
    %124 = vector.broadcast %cst_75 : f32 to vector<8x256xf32>
    %125 = arith.subf %124, %104 : vector<8x256xf32>
    %126 = arith.mulf %125, %104 : vector<8x256xf32>
    %127 = math.exp %126 : vector<8x256xf32>
    %128 = arith.mulf %123, %127 : vector<8x256xf32>
    %cst_76 = arith.constant 1.000000e+00 : f32
    %129 = vector.broadcast %cst_76 : f32 to vector<8x256xf32>
    %130 = arith.subf %129, %128 : vector<8x256xf32>
    %131 = arith.mulf %103, %130 : vector<8x256xf32>
    %cst_77 = arith.constant 1.000000e+00 : f32
    %132 = vector.broadcast %cst_77 : f32 to vector<8x256xf32>
    %133 = arith.addf %132, %131 : vector<8x256xf32>
    %134 = arith.mulf %96, %133 : vector<8x256xf32>
    %135 = arith.truncf %134 : vector<8x256xf32> to vector<8x256xbf16>
    %c0_78 = arith.constant 0 : index
    %c0_79 = arith.constant 0 : index
    %c0_80 = arith.constant 0 : index
    %136 = vector.load %arg18[%c0_78, %c0_79, %c0_80] : memref<1x256x128xbf16, #tpu.memory_space<vmem>>, vector<1x256x128xbf16>
    %137 = vector.shape_cast %136 : vector<1x256x128xbf16> to vector<256x128xbf16>
    %cst_81 = arith.constant dense<0.000000e+00> : vector<8x128xf32>
    %138 = tpu.matmul %135, %137, %cst_81 {dimension_numbers = #tpu.dot_dimension_numbers<[1], [0], [0], [1], [0, 0, 1, 1], [], []>} : vector<8x256xbf16>, vector<256x128xbf16>, vector<8x128xf32> -> vector<8x128xf32>
    %c0_82 = arith.constant 0 : index
    %c0_83 = arith.constant 0 : index
    %c0_84 = arith.constant 0 : index
    %139 = vector.load %arg19[%c0_82, %c0_83, %c0_84] : memref<1x1x128xf32, #tpu.memory_space<vmem>>, vector<1x1x128xf32>
    %140 = vector.shape_cast %139 : vector<1x1x128xf32> to vector<1x128xf32>
    %141 = vector.broadcast %140 : vector<1x128xf32> to vector<8x128xf32>
    %142 = arith.addf %138, %141 : vector<8x128xf32>
    %143 = arith.addf %142, %86 : vector<8x128xf32>
    %c0_85 = arith.constant 0 : index
    %c0_86 = arith.constant 0 : index
    %c0_87 = arith.constant 0 : index
    %144 = vector.load %arg20[%c0_85, %c0_86, %c0_87] : memref<1x1x128xf32, #tpu.memory_space<vmem>>, vector<1x1x128xf32>
    %145 = vector.shape_cast %144 : vector<1x1x128xf32> to vector<1x128xf32>
    %c0_88 = arith.constant 0 : index
    %c0_89 = arith.constant 0 : index
    %c0_90 = arith.constant 0 : index
    %146 = vector.load %arg21[%c0_88, %c0_89, %c0_90] : memref<1x1x128xf32, #tpu.memory_space<vmem>>, vector<1x1x128xf32>
    %147 = vector.shape_cast %146 : vector<1x1x128xf32> to vector<1x128xf32>
    %cst_91 = arith.constant dense<0.000000e+00> : vector<8xf32>
    %148 = vector.multi_reduction <add>, %143, %cst_91 [1] : vector<8x128xf32> to vector<8xf32>
    %149 = vector.shape_cast %148 : vector<8xf32> to vector<8x1xf32>
    %cst_92 = arith.constant 1.280000e+02 : f32
    %150 = vector.broadcast %cst_92 : f32 to vector<8x1xf32>
    %151 = arith.divf %149, %150 : vector<8x1xf32>
    %152 = vector.broadcast %151 : vector<8x1xf32> to vector<8x128xf32>
    %153 = arith.subf %143, %152 : vector<8x128xf32>
    %154 = arith.mulf %153, %153 : vector<8x128xf32>
    %cst_93 = arith.constant dense<0.000000e+00> : vector<8xf32>
    %155 = vector.multi_reduction <add>, %154, %cst_93 [1] : vector<8x128xf32> to vector<8xf32>
    %156 = vector.shape_cast %155 : vector<8xf32> to vector<8x1xf32>
    %cst_94 = arith.constant 1.280000e+02 : f32
    %157 = vector.broadcast %cst_94 : f32 to vector<8x1xf32>
    %158 = arith.divf %156, %157 : vector<8x1xf32>
    %159 = vector.broadcast %151 : vector<8x1xf32> to vector<8x128xf32>
    %160 = arith.subf %143, %159 : vector<8x128xf32>
    %cst_95 = arith.constant 9.99999996E-13 : f32
    %161 = vector.broadcast %cst_95 : f32 to vector<8x1xf32>
    %162 = arith.addf %158, %161 : vector<8x1xf32>
    %163 = math.rsqrt %162 : vector<8x1xf32>
    %164 = vector.broadcast %163 : vector<8x1xf32> to vector<8x128xf32>
    %165 = arith.mulf %160, %164 : vector<8x128xf32>
    %166 = vector.broadcast %145 : vector<1x128xf32> to vector<8x128xf32>
    %167 = arith.mulf %165, %166 : vector<8x128xf32>
    %168 = vector.broadcast %147 : vector<1x128xf32> to vector<8x128xf32>
    %169 = arith.addf %167, %168 : vector<8x128xf32>
    %c0_96 = arith.constant 0 : index
    %c0_97 = arith.constant 0 : index
    %170 = vector.load %arg25[%c0_96, %c0_97] : memref<8x128xf32, #tpu.memory_space<vmem>>, vector<8x128xf32>
    tpu.vector_store %arg25[%c0_96, %c0_97], %169 {strides = array<i32>} : memref<8x128xf32, #tpu.memory_space<vmem>>, vector<8x128xf32>,
    %c1_i32 = arith.constant 1 : i32
    %171 = arith.cmpi eq, %arg1, %c1_i32 : i32
    %172 = arith.extui %171 : i1 to i32
    %c0_i32_98 = arith.constant 0 : i32
    %173 = arith.cmpi ne, %172, %c0_i32_98 : i32
    scf.if %173 {
      %174 = vector.extract_strided_slice %169 {offsets = [0, 0], sizes = [1, 128], strides = [1, 1]} : vector<8x128xf32> to vector<1x128xf32>
      %175 = arith.truncf %174 : vector<1x128xf32> to vector<1x128xbf16>
      %c0_99 = arith.constant 0 : index
      %c0_100 = arith.constant 0 : index
      %176 = vector.load %arg22[%c0_99, %c0_100] : memref<128x128xbf16, #tpu.memory_space<vmem>>, vector<128x128xbf16>
      %cst_101 = arith.constant dense<0.000000e+00> : vector<1x128xf32>
      %177 = tpu.matmul %175, %176, %cst_101 {dimension_numbers = #tpu.dot_dimension_numbers<[1], [0], [0], [1], [0, 0, 1, 1], [], []>} : vector<1x128xbf16>, vector<128x128xbf16>, vector<1x128xf32> -> vector<1x128xf32>
      %c0_102 = arith.constant 0 : index
      %c0_103 = arith.constant 0 : index
      %178 = vector.load %arg23[%c0_102, %c0_103] : memref<1x128xf32, #tpu.memory_space<vmem>>, vector<1x128xf32>
      %179 = arith.addf %177, %178 : vector<1x128xf32>
      %180 = math.tanh %179 : vector<1x128xf32>
      %c0_104 = arith.constant 0 : index
      %c0_105 = arith.constant 0 : index
      %c0_106 = arith.constant 0 : index
      %181 = vector.load %arg24[%c0_104, %c0_105, %c0_106] : memref<1x1x128xf32, #tpu.memory_space<vmem>>, vector<1x1x128xf32>
      %182 = vector.shape_cast %181 : vector<1x1x128xf32> to vector<1x128xf32>
      %183 = vector.shape_cast %180 : vector<1x128xf32> to vector<1x1x128xf32>
      tpu.vector_store %arg24[%c0_104, %c0_105, %c0_106], %183 {strides = array<i32>} : memref<1x1x128xf32, #tpu.memory_space<vmem>>, vector<1x1x128xf32>,
    } else {
    }
    return
  }
  func.func @transform_0(%arg0: i32, %arg1: i32) -> (i32, i32, i32) {
    %c0_i32 = arith.constant 0 : i32
    %c0_i32_0 = arith.constant 0 : i32
    %c0_i32_1 = arith.constant 0 : i32
    return %arg0, %c0_i32, %c0_i32_0 : i32, i32, i32
  }
  func.func @transform_1(%arg0: i32, %arg1: i32) -> (i32, i32, i32) {
    %c0_i32 = arith.constant 0 : i32
    %c0_i32_0 = arith.constant 0 : i32
    %c0_i32_1 = arith.constant 0 : i32
    return %arg0, %c0_i32, %c0_i32_0 : i32, i32, i32
  }
  func.func @transform_2(%arg0: i32, %arg1: i32) -> (i32, i32) {
    %c0_i32 = arith.constant 0 : i32
    %c0_i32_0 = arith.constant 0 : i32
    %c0_i32_1 = arith.constant 0 : i32
    return %c0_i32, %c0_i32_0 : i32, i32
  }
  func.func @transform_3(%arg0: i32, %arg1: i32) -> (i32, i32) {
    %c0_i32 = arith.constant 0 : i32
    %c0_i32_0 = arith.constant 0 : i32
    %c0_i32_1 = arith.constant 0 : i32
    return %c0_i32, %c0_i32_0 : i32, i32
  }
  func.func @transform_4(%arg0: i32, %arg1: i32) -> (i32, i32, i32, i32) {
    %c0_i32 = arith.constant 0 : i32
    %c0_i32_0 = arith.constant 0 : i32
    %c0_i32_1 = arith.constant 0 : i32
    %c0_i32_2 = arith.constant 0 : i32
    return %arg1, %c0_i32, %c0_i32_0, %c0_i32_1 : i32, i32, i32, i32
  }
  func.func @transform_5(%arg0: i32, %arg1: i32) -> (i32, i32, i32, i32) {
    %c0_i32 = arith.constant 0 : i32
    %c0_i32_0 = arith.constant 0 : i32
    %c0_i32_1 = arith.constant 0 : i32
    %c0_i32_2 = arith.constant 0 : i32
    return %arg1, %c0_i32, %c0_i32_0, %c0_i32_1 : i32, i32, i32, i32
  }
  func.func @transform_6(%arg0: i32, %arg1: i32) -> (i32, i32, i32, i32) {
    %c0_i32 = arith.constant 0 : i32
    %c0_i32_0 = arith.constant 0 : i32
    %c0_i32_1 = arith.constant 0 : i32
    %c0_i32_2 = arith.constant 0 : i32
    return %arg1, %c0_i32, %c0_i32_0, %c0_i32_1 : i32, i32, i32, i32
  }
  func.func @transform_7(%arg0: i32, %arg1: i32) -> (i32, i32, i32, i32) {
    %c0_i32 = arith.constant 0 : i32
    %c0_i32_0 = arith.constant 0 : i32
    %c0_i32_1 = arith.constant 0 : i32
    %c0_i32_2 = arith.constant 0 : i32
    return %arg1, %c0_i32, %c0_i32_0, %c0_i32_1 : i32, i32, i32, i32
  }
  func.func @transform_8(%arg0: i32, %arg1: i32) -> (i32, i32, i32, i32) {
    %c0_i32 = arith.constant 0 : i32
    %c0_i32_0 = arith.constant 0 : i32
    %c0_i32_1 = arith.constant 0 : i32
    %c0_i32_2 = arith.constant 0 : i32
    return %arg1, %c0_i32, %c0_i32_0, %c0_i32_1 : i32, i32, i32, i32
  }
  func.func @transform_9(%arg0: i32, %arg1: i32) -> (i32, i32, i32, i32) {
    %c0_i32 = arith.constant 0 : i32
    %c0_i32_0 = arith.constant 0 : i32
    %c0_i32_1 = arith.constant 0 : i32
    %c0_i32_2 = arith.constant 0 : i32
    return %arg1, %c0_i32, %c0_i32_0, %c0_i32_1 : i32, i32, i32, i32
  }
  func.func @transform_10(%arg0: i32, %arg1: i32) -> (i32, i32, i32, i32) {
    %c0_i32 = arith.constant 0 : i32
    %c0_i32_0 = arith.constant 0 : i32
    %c0_i32_1 = arith.constant 0 : i32
    %c0_i32_2 = arith.constant 0 : i32
    return %arg1, %c0_i32, %c0_i32_0, %c0_i32_1 : i32, i32, i32, i32
  }
  func.func @transform_11(%arg0: i32, %arg1: i32) -> (i32, i32, i32) {
    %c0_i32 = arith.constant 0 : i32
    %c0_i32_0 = arith.constant 0 : i32
    %c0_i32_1 = arith.constant 0 : i32
    return %arg1, %c0_i32, %c0_i32_0 : i32, i32, i32
  }
  func.func @transform_12(%arg0: i32, %arg1: i32) -> (i32, i32, i32) {
    %c0_i32 = arith.constant 0 : i32
    %c0_i32_0 = arith.constant 0 : i32
    %c0_i32_1 = arith.constant 0 : i32
    return %arg1, %c0_i32, %c0_i32_0 : i32, i32, i32
  }
  func.func @transform_13(%arg0: i32, %arg1: i32) -> (i32, i32, i32) {
    %c0_i32 = arith.constant 0 : i32
    %c0_i32_0 = arith.constant 0 : i32
    %c0_i32_1 = arith.constant 0 : i32
    return %arg1, %c0_i32, %c0_i32_0 : i32, i32, i32
  }
  func.func @transform_14(%arg0: i32, %arg1: i32) -> (i32, i32, i32) {
    %c0_i32 = arith.constant 0 : i32
    %c0_i32_0 = arith.constant 0 : i32
    %c0_i32_1 = arith.constant 0 : i32
    return %arg1, %c0_i32, %c0_i32_0 : i32, i32, i32
  }
  func.func @transform_15(%arg0: i32, %arg1: i32) -> (i32, i32, i32) {
    %c0_i32 = arith.constant 0 : i32
    %c0_i32_0 = arith.constant 0 : i32
    %c0_i32_1 = arith.constant 0 : i32
    return %arg1, %c0_i32, %c0_i32_0 : i32, i32, i32
  }
  func.func @transform_16(%arg0: i32, %arg1: i32) -> (i32, i32, i32) {
    %c0_i32 = arith.constant 0 : i32
    %c0_i32_0 = arith.constant 0 : i32
    %c0_i32_1 = arith.constant 0 : i32
    return %arg1, %c0_i32, %c0_i32_0 : i32, i32, i32
  }
  func.func @transform_17(%arg0: i32, %arg1: i32) -> (i32, i32, i32) {
    %c0_i32 = arith.constant 0 : i32
    %c0_i32_0 = arith.constant 0 : i32
    %c0_i32_1 = arith.constant 0 : i32
    return %arg1, %c0_i32, %c0_i32_0 : i32, i32, i32
  }
  func.func @transform_18(%arg0: i32, %arg1: i32) -> (i32, i32, i32) {
    %c0_i32 = arith.constant 0 : i32
    %c0_i32_0 = arith.constant 0 : i32
    %c0_i32_1 = arith.constant 0 : i32
    return %arg1, %c0_i32, %c0_i32_0 : i32, i32, i32
  }
  func.func @transform_19(%arg0: i32, %arg1: i32) -> (i32, i32, i32) {
    %c0_i32 = arith.constant 0 : i32
    %c0_i32_0 = arith.constant 0 : i32
    %c0_i32_1 = arith.constant 0 : i32
    return %arg1, %c0_i32, %c0_i32_0 : i32, i32, i32
  }
  func.func @transform_20(%arg0: i32, %arg1: i32) -> (i32, i32) {
    %c0_i32 = arith.constant 0 : i32
    %c0_i32_0 = arith.constant 0 : i32
    %c0_i32_1 = arith.constant 0 : i32
    return %c0_i32, %c0_i32_0 : i32, i32
  }
  func.func @transform_21(%arg0: i32, %arg1: i32) -> (i32, i32) {
    %c0_i32 = arith.constant 0 : i32
    %c0_i32_0 = arith.constant 0 : i32
    %c0_i32_1 = arith.constant 0 : i32
    return %c0_i32, %c0_i32_0 : i32, i32
  }
  func.func @transform_22(%arg0: i32, %arg1: i32) -> (i32, i32, i32) {
    %c0_i32 = arith.constant 0 : i32
    %c0_i32_0 = arith.constant 0 : i32
    %c0_i32_1 = arith.constant 0 : i32
    return %arg0, %c0_i32, %c0_i32_0 : i32, i32, i32
  }
}

</mosaic_0001>

<bundles_post_ra>
// kernel: neural_network_forward.1
= control target key start
LH: loop header
LB: loop body
LE: loop exit
PB: predicated region body
PF: predicated region fallthrough
CT: control target
= control target key end

     0   :  { %s6043_s0 = inlined_call_operand.vmem [shape: f32[2,8,128], index: 0, kind: input, shape index: {}]   ;;  %s6044_s1 = inlined_call_operand.vmem [shape: f32[2,8,8], index: 1, kind: input, shape index: {}]   ;;  %s6045_s2 = inlined_call_operand.vmem [shape: f32[1,128], index: 2, kind: input, shape index: {}]   ;;  %s6046_s3 = inlined_call_operand.vmem [shape: f32[1,128], index: 3, kind: input, shape index: {}, may-alias: {3,21}]   ;;  %s6047_s4 = inlined_call_operand.hbm [shape: bf16[2,4,128,32], index: 4, kind: input, shape index: {}]   ;;  %s6048_s5 = inlined_call_operand.vmem [shape: f32[2,4,1,32], index: 5, kind: input, shape index: {}, may-alias: {5,7,9}]   ;;  %s6049_s6 = inlined_call_operand.hbm [shape: bf16[2,4,128,32], index: 6, kind: input, shape index: {}]   ;;  %s6050_s7 = inlined_call_operand.vmem [shape: f32[2,4,1,32], index: 7, kind: input, shape index: {}, may-alias: {5,7,9}]   ;;  %s6051_s8 = inlined_call_operand.vmem [shape: bf16[2,4,128,32], index: 8, kind: input, shape index: {}]   ;;  %s6052_s9 = inlined_call_operand.vmem [shape: f32[2,4,1,32], index: 9, kind: input, shape index: {}, may-alias: {5,7,9}]   ;;  %s6053_s10 = inlined_call_operand.vmem [shape: bf16[2,4,32,128], index: 10, kind: input, shape index: {}]   ;;  %s6054_s11 = inlined_call_operand.vmem [shape: f32[2,1,128], index: 11, kind: input, shape index: {}, may-alias: {11,13,17,19}]   ;;  %s6055_s12 = inlined_call_operand.vmem [shape: f32[2,1,128], index: 12, kind: input, shape index: {}, may-alias: {12,18}]   ;;  %s6056_s13 = inlined_call_operand.vmem [shape: f32[2,1,128], index: 13, kind: input, shape index: {}, may-alias: {11,13,17,19}]   ;;  %s6057_s14 = inlined_call_operand.vmem [shape: bf16[2,128,256], index: 14, kind: input, shape index: {}]   ;;  %s6058_s15 = inlined_call_operand.vmem [shape: f32[2,1,256], index: 15, kind: input, shape index: {}]   ;;  %s6059_s16 = inlined_call_operand.vmem [shape: bf16[2,256,128], index: 16, kind: input, shape index: {}]   ;;  %s6060_s17 = inlined_call_operand.vmem [shape: f32[2,1,128], index: 17, kind: input, shape index: {}, may-alias: {11,13,17,19}]   ;;  %s6061_s18 = inlined_call_operand.vmem [shape: f32[2,1,128], index: 18, kind: input, shape index: {}, may-alias: {12,18}]   ;;  %s6062_s19 = inlined_call_operand.vmem [shape: f32[2,1,128], index: 19, kind: input, shape index: {}, may-alias: {11,13,17,19}]   ;;  %s6063_s20 = inlined_call_operand.vmem [shape: bf16[128,128], index: 20, kind: input, shape index: {}]   ;;  %s6064_s21 = inlined_call_operand.vmem [shape: f32[1,128], index: 21, kind: input, shape index: {}, may-alias: {3,21}]   ;;  %s6065_s22 = inlined_call_operand.hbm [shape: f32[2,1,128], index: 22, kind: output, shape index: {}]  }
   0x1   :  { %6094 = sst [smem:[#allocation30_spill]] %s6043_s0 }
   0x2   :  { %6095 = sst [smem:[#allocation31_spill]] %s6044_s1 }
   0x3   :  { %6096 = sst [smem:[#allocation32_spill]] %s6045_s2 }
   0x4   :  { %6097 = sst [smem:[#allocation33_spill]] %s6046_s3 }
   0x5   :  { %6098 = sst [smem:[#allocation34_spill]] %s6047_s4 }
   0x6   :  { %6099 = sst [smem:[#allocation35_spill]] %s6048_s5 }
   0x7   :  { %6100 = sst [smem:[#allocation36_spill]] %s6049_s6 }
   0x8   :  { %6101 = sst [smem:[#allocation37_spill]] %s6050_s7 }
   0x9   :  { %6102 = sst [smem:[#allocation38_spill]] %s6051_s8 }
   0xa   :  { %6103 = sst [smem:[#allocation39_spill]] %s6052_s9 }
   0xb   :  { %6104 = sst [smem:[#allocation40_spill]] %s6053_s10 }
   0xc   :  { %6105 = sst [smem:[#allocation41_spill]] %s6054_s11 }
   0xd   :  { %6106 = sst [smem:[#allocation42_spill]] %s6055_s12 }
   0xe   :  { %6107 = sst [smem:[#allocation43_spill]] %s6056_s13 }
   0xf   :  { %6108 = sst [smem:[#allocation44_spill]] %s6057_s14 }
  0x10   :  { %6109 = sst [smem:[#allocation45_spill]] %s6058_s15 }
  0x11   :  { %6110 = sst [smem:[#allocation46_spill]] %s6059_s16 }
  0x12   :  { %6111 = sst [smem:[#allocation47_spill]] %s6060_s17 }
  0x13   :  { %6112 = sst [smem:[#allocation48_spill]] %s6061_s18 }
  0x14   :  { %6113 = sst [smem:[#allocation49_spill]] %s6062_s19 }
  0x15   :  { %6114 = sst [smem:[#allocation50_spill]] %s6063_s20 }
  0x16   :  { %6115 = sst [smem:[#allocation51_spill]] %s6064_s21 }
  0x17   :  { %6116 = sst [smem:[#allocation52_spill]] %s6065_s22 }
  0x18   :  { %27 = vsyncpa [#allocation4], 0 }
  0x19   :  { %29 = vsyncpa [#allocation4 + $0x1], 0 }
  0x1a   :  { %30 = vsyncpa [#allocation7], 0 }
  0x1b   :  { %32 = vsyncpa [#allocation7 + $0x1], 0 }
  0x1c   :  { %33 = vsyncpa [#allocation5], 0 }
  0x1d   :  { %35 = vsyncpa [#allocation5 + $0x1], 0  ;;  %s5250_s3 = smov 0   ;;  %s5252_s28 = smov 0  }
  0x1e   :  { %s5254_s29 = smov 0   ;;  %s5256_s30 = smov 0  }
  0x1f   :  { %s5258_s4 = smov 0   ;;  %s5260_s0 = smov 0  }
  0x20   :  { %s5262_s23 = smov 0   ;;  %s5264_s1 = smov 0  }
  0x21   :  { %s5266_s5 = smov 0   ;;  %s5268_s24 = smov 0  }
  0x22   :  { %s5270_s6 = smov 0  }
  0x23 LB: > { %6117 = sst [smem:[#allocation12_spill]] %s5082_s3  ;;  %s3915_s25 = sadd.s32 4294967295, %s5122_s6   ;;  %s5122_s6 = sphi %s5270_s6, %s41_s6   ;;  %s5118_s24 = sphi %s5268_s24, %s6199_s24   ;;  %s5114_s5 = sphi %s5266_s5, %s6198_s5   ;;  %s5110_s1 = sphi %s5264_s1, %s6197_s1   ;;  %s5106_s23 = sphi %s5262_s23, %s6196_s23   ;;  %s5102_s0 = sphi %s5260_s0, %s6195_s0   ;;  %s5098_s4 = sphi %s5258_s4, %s6194_s4   ;;  %s5094_s30 = sphi %s5256_s30, %s6193_s30   ;;  %s5090_s29 = sphi %s5254_s29, %s6192_s29   ;;  %s5086_s28 = sphi %s5252_s28, %s6201_s28   ;;  %s5082_s3 = sphi %s5250_s3, %s6200_s3  }
  0x24   : > { %6118 = sst [smem:[#allocation13_spill]] %s5090_s29  ;;  %s3916_s26 = sadd.s32 4294967294, %s5122_s6  }
  0x25   : > { %6119 = sst [smem:[#allocation14_spill]] %s5098_s4  ;;  %s50_s2 = sadd.s32 1, %s5114_s5 }
  0x26   : > { %6120 = sst [smem:[#allocation15_spill]] %s5102_s0  ;;  %s53_s27 = sadd.s32 1, %s5118_s24 }
  0x27   : > { %6121 = sst [smem:[#allocation16_spill]] %s5110_s1  ;;  %p51_p0 = scmp.ge.s32.totalorder %s50_s2, 2 }
  0x28   : > { %6122 = sst [smem:[#allocation17_spill]] %s5114_s5  ;;  %s154_s22 = sadd.s32 1, %s5102_s0 }
  0x29   : > { %6123 = sst [smem:[#allocation18_spill]] %s5118_s24  ;;  %p161_p1 = scmp.ne.s32.totalorder %s5102_s0, %s5098_s4 }
  0x2a   : > { %6124 = sst [smem:[#allocation19_spill]] %s5122_s6  ;;  %p162_p2 = scmp.eq.s32.totalorder %s5122_s6, 0 }
  0x2b   : > { %s6203_s2 = smov (%p51_p0, %s50_s2), 0  ;;  %s6205_s27 = smov (!%p51_p0, %s53_s27), %s5118_s24 }
  0x2c   : > { %6125 = sst [smem:[#allocation20_spill]] %s6203_s2  ;;  %s151_s21 = ssub.s32 %s5114_s5, %s6203_s2 }
  0x2d   : > { %p5316_p3 = por %p162_p2, %p161_p1  ;;  %p55_p4 = scmp.ge.s32.totalorder %s6205_s27, 2 }
  0x2e   : > { %p152_p5 = scmp.eq.s32.totalorder %s151_s21, 0  ;;  %p167_p6 = scmp.ne.s32.totalorder %s5098_s4, %s5094_s30 }
  0x2f   : > { %p168_p7 = scmp.eq.s32.totalorder %s3915_s25, 0  ;;  %s6207_s27 = smov (%p55_p4, %s6205_s27), 0 }
  0x30   : > { %6127 = sst [smem:[#allocation21_spill]] %s6207_s27  ;;  %s609_s18 = ssub.s32 %s5118_s24, %s6207_s27 }
  0x31   : > { %s5324_s19 = scalar_select %p152_p5, %s5102_s0, %s154_s22  }
  0x32   : > { %p5326_p8 = por %p168_p7, %p167_p6  ;;  %p610_p9 = scmp.eq.s32.totalorder %s609_s18, 0 }
  0x33   : > { %6128 = sst [smem:[#allocation22_spill]] %s5324_s19  ;;  %s612_s17 = sadd.s32 1, %s5090_s29 }
  0x34   : > { %s6129_s2 = scalar_select %p5326_p8, 1, 0 }
  0x35   : > { %p622_p10 = scmp.ne.s32.totalorder %s5090_s29, %s5086_s28  ;;  %p623_p11 = scmp.eq.s32.totalorder %s3915_s25, 3 }
  0x36   : > { %s5336_s21 = scalar_select %p610_p9, %s5090_s29, %s612_s17  }
  0x37   : > { %p5338_p12 = por %p623_p11, %p622_p10  ;;  %p628_p13 = scmp.ne.s32.totalorder %s5086_s28, %s5082_s3 }
  0x38   : > { %6130 = sst [smem:[#allocation23_spill]] %s5336_s21  ;;  %p629_p0 = scmp.eq.s32.totalorder %s3916_s26, 3 }
  0x39   : > { %s6131_s30 = scalar_select %p5338_p12, 1, 0 }
  0x3a   : > { %p4653_p1 = scmp.lt.s32.totalorder %s5122_s6, 4  ;;  %s5346_s22 = sand.u32 1, %s5102_s0  }
  0x3b   : > { %6132 = sst [smem:[#allocation24_spill]] %s6131_s30  ;;  %p5348_p2 = por %p629_p0, %p628_p13 }
  0x3c   : > { %s6076_s27 = sshll.u32 %s5346_s22, 8  ;;  %s6077_s25 = sshll.u32 %s5114_s5, 12 }
  0x3d   : > { %s6133_s18 = scalar_select %p5348_p2, 1, 0 }
  0x3e   : > { %s6135_s19 = sld [smem:[#allocation34_spill]]  ;;  %s679_s26 = scalar_lea.vmem [#allocation3], %s6076_s27 }
  0x3f   : > { %6134 = sst [smem:[#allocation25_spill]] %s6133_s18  ;;  %s686_s0 = sshll.u32 %s679_s26, 4  ;;  %s5369_s0 = int_to_ptr.vmem [resolvable:$true] %s686_s0 }
  0x40   : > { %p5365_p4 = pnand %p4653_p1, %p5316_p3 }
  0x42   : > { %p4938_p6 = pneg %p5365_p4 }
  0x44   : > { %s5359_s21 = scalar_lea.hbm %s6135_s19, %s6077_s25  ;;  %s4941_s20 = scalar_lea.hbm %s6135_s19, 8192 }
  0x45   : > { %s4936_s24 = scalar_lea.hbm %s5359_s21, 4096  ;;  %p4942_p3 = scmp.lt.u32.totalorder %s5359_s21, %s6135_s19 }
  0x46   : > { %p4937_p5 = scmp.ne.s32.totalorder %s5359_s21, %s4936_s24  ;;  %p4943_p10 = scmp.lt.u32.totalorder %s4941_s20, %s4936_s24 }
  0x47   : > { %p4945_p13 = scmp.lt.u32.totalorder %s4936_s24, %s5359_s21 }
  0x48   : > { %p4939_p7 = pnand %p4938_p6, %p4937_p5  ;;  %p4944_p11 = por %p4943_p10, %p4942_p3 }
  0x4a   : > { %p4940_p9 = pneg %p4939_p7  ;;  %p4946_p0 = por %p4945_p13, %p4944_p11 }
  0x4c   : > { %p4947_p1 = pnand %p4946_p0, %p4940_p9 }
  0x4e   : > { %4950 = shalt.err (!%p4947_p1)
}
  0x4f   : > { %s4951_s18 = scalar_lea.vmem %s5369_s0, 4096  ;;  %s5124_s17 = smov [#allocation3]  }
  0x50   : > { %p4952_p5 = scmp.ne.s32.totalorder %s5369_s0, %s4951_s18  ;;  %s4956_s26 = sshll.u32 %s5124_s17, 4  ;;  %s4957_s26 = int_to_ptr.vmem [resolvable:$false] %s4956_s26 }
  0x51   : > { %s4958_s27 = scalar_lea.vmem %s4957_s26, 8192  ;;  %p4959_p12 = scmp.lt.s32.totalorder %s5369_s0, %s4957_s26 }
  0x52   : > { %p4954_p7 = pnand %p4952_p5, %p4938_p6  ;;  %p4960_p3 = scmp.lt.s32.totalorder %s4958_s27, %s4951_s18 }
  0x54   : > { %p4955_p2 = pneg %p4954_p7  ;;  %p4961_p10 = por %p4960_p3, %p4959_p12 }
  0x56   : > { %p4962_p11 = pnand %p4961_p10, %p4955_p2 }
  0x58   : > { %4965 = shalt.err (!%p4962_p11)
}
  0x59   : > { %s6083_s25 = smov 64   ;;  %s5126_s24 = smov 4  }
  0x5a   : > { %s6137_s18 = scalar_lea.sflag [#allocation4], %s5346_s22  ;;  %p3925_p12 = scmp.ge.s32.totalorder %s5122_s6, 1 }
  0x5b   : > { %4645 = dma.hbm_to_vmem [thread:$0]  (!%p5365_p4), %s5359_s21, 4096, %s5369_s0, %s6137_s18, %s6083_s25, %s6083_s25, %s5126_s24  }
  0x5c   : > { %p811_p2 = scmp.lt.s32.totalorder %s5122_s6, 5  ;;  %s6139_s17 = sshll.u32 %s5114_s5, 12 }
  0x5d   : > { %s6140_s19 = sld [smem:[#allocation36_spill]]  ;;  %s6141_s30 = sshll.u32 %s5346_s22, 8 }
  0x5e   : > { %p5404_p9 = pnand %p3925_p12, %p811_p2  ;;  %s707_s16 = scalar_lea.vmem [#allocation6], %s6141_s30 }
  0x5f   : > { %s714_s15 = sshll.u32 %s707_s16, 4  ;;  %s704_s0 = scalar_lea.sflag [#allocation7], %s5346_s22  ;;  %s5417_s15 = int_to_ptr.vmem [resolvable:$true] %s714_s15 }
  0x63   : > { %s5413_s3 = scalar_lea.hbm %s6140_s19, %s6139_s17  ;;  %s4971_s17 = scalar_lea.hbm %s6140_s19, 8192 }
  0x64   : > { %s4966_s21 = scalar_lea.hbm %s5413_s3, 4096  ;;  %p4972_p5 = scmp.lt.u32.totalorder %s5413_s3, %s6140_s19 }
  0x65   : > { %p4967_p13 = scmp.ne.s32.totalorder %s5413_s3, %s4966_s21  ;;  %p4973_p7 = scmp.lt.u32.totalorder %s4971_s17, %s4966_s21 }
  0x66   : > { %p4975_p10 = scmp.lt.u32.totalorder %s4966_s21, %s5413_s3 }
  0x67   : > { %p4969_p0 = pnand %p4967_p13, %p4938_p6  ;;  %p4974_p3 = por %p4973_p7, %p4972_p5 }
  0x69   : > { %p4970_p1 = pneg %p4969_p0  ;;  %p4976_p11 = por %p4975_p10, %p4974_p3 }
  0x6b   : > { %p4977_p12 = pnand %p4976_p11, %p4970_p1 }
  0x6d   : > { %4980 = shalt.err (!%p4977_p12)
}
  0x6e   : > { %s4981_s16 = scalar_lea.vmem %s5417_s15, 4096  ;;  %s5127_s30 = smov [#allocation6]  }
  0x6f   : > { %p4982_p2 = scmp.ne.s32.totalorder %s5417_s15, %s4981_s16  ;;  %s4986_s18 = sshll.u32 %s5127_s30, 4  ;;  %s4987_s18 = int_to_ptr.vmem [resolvable:$false] %s4986_s18 }
  0x70   : > { %s4988_s25 = scalar_lea.vmem %s4987_s18, 8192  ;;  %p4989_p8 = scmp.lt.s32.totalorder %s5417_s15, %s4987_s18 }
  0x71   : > { %p4984_p13 = pnand %p4982_p2, %p4938_p6  ;;  %p4990_p5 = scmp.lt.s32.totalorder %s4988_s25, %s4981_s16 }
  0x73   : > { %p4985_p0 = pneg %p4984_p13  ;;  %p4991_p7 = por %p4990_p5, %p4989_p8 }
  0x75   : > { %p4992_p3 = pnand %p4991_p7, %p4985_p0 }
  0x77   : > { %4995 = shalt.err (!%p4992_p3)
}
  0x78   : > { %s6142_s21 = smov 64   ;;  %815 = sbr.rel (%p5404_p9) target bundleno = 3152 (0xc50), region = 108 }
  0x79   : > { %4648 = dma.hbm_to_vmem [thread:$0]  (!%p5365_p4), %s5413_s3, 4096, %s5417_s15, %s704_s0, %s6142_s21, %s6142_s21, %s5126_s24  }
  0x7f   : > { %s817_s26 = sand.u32 1, %s5098_s4   ;;  %p6143_p8 = scmp.ne.s32.totalorder %s6129_s2, 0 }
  0x80   : > { %s3926_s17 = sshll.u32 %s817_s26, 8  ;;  %s818_s27 = scalar_lea.sflag [#allocation4], %s817_s26 }
  0x81   : > { %s5451_s16 = scalar_lea.vmem [#allocation3], %s3926_s17 }
  0x82   : > { %5069 = dma.done.wait (%p6143_p8), %s818_s27, 4096  }
  0x83   : > { %5071 = vsyncadd (%p6143_p8), %s818_s27, 4294963200  ;;  %s827_s29 = scalar_lea.sflag [#allocation7], %s817_s26  ;;  %s5457_s22 = scalar_lea.vmem [#allocation6], %s3926_s17 }
  0x84   : > { %5073 = dma.done.wait (%p6143_p8), %s827_s29, 4096  }
  0x85   : > { %5075 = vsyncadd (%p6143_p8), %s827_s29, 4294963200  ;;  %p957_p4 = scmp.lt.s32.totalorder %s5110_s1, 1  ;;  %p965_p6 = scmp.lt.s32.totalorder %s5106_s23, 1 }
  0x86   : > { %s6144_s30 = sld [smem:[#allocation30_spill]]  ;;  %s6145_s26 = sld [smem:[#allocation31_spill]] }
  0x87   : > { %s958_s3 = scalar_select %p957_p4, %s5110_s1, 1 }
  0x88   : > { %s5468_s24 = scalar_select %p965_p6, %s5106_s23, 1 }
  0x89   : > { %s3928_s2 = sshll.u32 %s958_s3, 3  ;;  %s6147_s5 = sld [smem:[#allocation35_spill]] }
  0x8a   : > { %s3930_s27 = sshll.u32 %s5468_s24, 2  ;;  %s4125_s29 = sshll.u32 %s5468_s24, 8 }
  0x8b   : > { %s6148_s7 = sld [smem:[#allocation37_spill]]  ;;  %s6149_s8 = sld [smem:[#allocation38_spill]] }
  0x8c   : > { %s960_s18 = scalar_lea.vmem %s6144_s30, %s3928_s2  ;;  %s5476_s17 = scalar_lea.vmem %s6145_s26, %s3928_s2 }
  0x8d   : > { %6146 = sst [smem:[#allocation26_spill]] %s5476_s17  ;;  %s6150_s9 = sld [smem:[#allocation39_spill]] }
  0x8e   : > { %s4126_s19 = sshll.u32 %s5468_s24, 6  ;;  %s6153_s10 = sld [smem:[#allocation40_spill]] }
  0x8f   : > { %s5483_s4 = scalar_lea.vmem %s6147_s5, %s3930_s27  ;;  %s6157_s14 = sld [smem:[#allocation44_spill]] }
  0x90   : > { %s3939_s5 = sshll.u32 %s5468_s24, 1  ;;  %s6159_s6 = sld [smem:[#allocation45_spill]] }
  0x91   : > { %s5488_s20 = scalar_lea.vmem %s6148_s7, %s3930_s27  ;;  %s5493_s2 = scalar_lea.vmem %s6149_s8, %s4125_s29 }
  0x92   : > { %s6160_s17 = sld [smem:[#allocation46_spill]]  ;;  %s6161_s30 = sld [smem:[#allocation47_spill]] }
  0x93   : > { %s5498_s26 = scalar_lea.vmem %s6150_s9, %s3930_s27  ;;  %s4127_s27 = sshll.u32 %s5468_s24, 7 }
  0x94   : > { %6151 = sst [smem:[#allocation27_spill]] %s5498_s26  ;;  %s5508_s7 = scalar_lea.vmem %s6153_s10, %s4126_s19 }
  0x95   : > { %6154 = sst [smem:[#allocation28_spill]] %s5508_s7  ;;  %s5522_s26 = scalar_lea.vmem %s6157_s14, %s4127_s27 }
  0x96   : > { %6158 = sst [smem:[#allocation29_spill]] %s5522_s26  ;;  %s5528_s19 = scalar_lea.vmem %s6159_s6, %s3939_s5 }
  0x97   : > { %s6162_s9 = sld [smem:[#allocation48_spill]]  ;;  %s6163_s26 = sld [smem:[#allocation49_spill]] }
  0x98   : > { %s5533_s0 = scalar_lea.vmem %s6160_s17, %s4127_s27  ;;  %s1012_s25 = scalar_lea.vmem %s6161_s30, %s5468_s24 }
  0x99   : > { %s6164_s1 = sand.u32 1, %s5086_s28   ;;  %p3942_p9 = scmp.ne.s32.totalorder %s5106_s23, 0 }
  0x9a   : > { %s5549_s5 = scalar_lea.vmem [#allocation8], %s6164_s1  ;;  %v1024_v0 = vld [vmem:[%s960_s18] sm:$0xff] (!%p3942_p9)  ;;  %s6165_s12 = sld [smem:[#allocation32_spill]] (!%p3942_p9) }
  0x9b   : > { %1023 = sbr.rel (%p3942_p9) target bundleno = 467 (0x1d3), region = 120  ;;  %1027 = vadd.xlane.f32.xlu0 (!%p3942_p9), %v1024_v0 }
  0x9d   : > { %s1015_s21 = scalar_lea.vmem %s6162_s9, %s5468_s24  ;;  %s1018_s7 = scalar_lea.vmem %s6163_s26, %s5468_s24 }
  0x9e   : > { %s6166_s26 = sld [smem:[#allocation33_spill]] (!%p3942_p9) }
  0xa0   : > { %v3943_v9 = vld [vmem:[%s6165_s12] ss:$0 sm:$0xff] (!%p3942_p9) }
  0xa4   : > { %v3944_v11 = vld [vmem:[%s6166_s26] ss:$0 sm:$0xff] }
 0x128   : > { %v1028_v1 = vpop.xlane.xlu0 %1027 }
 0x129   : > { %v1030_v2 = vmul.f32 0.0078125, %v1028_v1 }
 0x12b   : > { %v1031_v3 = vsub.f32 %v1024_v0, %v1030_v2 }
 0x12d   : > { %v1032_v4 = vmul.f32 %v1031_v3, %v1031_v3 }
 0x12f   : > { %1033 = vadd.xlane.f32.xlu0 %v1032_v4 }
 0x1bc   : > { %v1034_v5 = vpop.xlane.xlu0 %1033 }
 0x1bd   : > { %v1035_v6 = vmul.f32 0.0078125, %v1034_v5 }
 0x1bf   : > { %v1036_v7 = vadd.f32 1e-12, %v1035_v6 }
 0x1c1   : > { %4751 = vrsqrt.f32 %v1036_v7 }
 0x1cb   : > { %v4752_v8 = vpop.eup %4751 }
 0x1cc   : > { %v1038_v10 = vmul.f32 %v4752_v8, %v1031_v3 }
 0x1ce   : > { %v1045_v12 = vmul.f32 %v3943_v9, %v1038_v10 }
 0x1d0   : > { %v1052_v13 = vadd.f32 %v3944_v11, %v1045_v12 }
 0x1d2   : > { %1053 = vst [vmem:[#allocation2] sm:$0xff] %v1052_v13 }
 0x1d3 PF: > { %v4753_v14 = vld [vmem:[%s5451_s16] sm:$0xff]   ;;  %v5128_v15 = vmov 0.0   ;;  %v4755_v17 = vld [vmem:[%s5451_s16 + $0x8] sm:$0xff]   ;;  %vm5129_vm0 = vmmov 0   ;;  %v4757_v19 = vld [vmem:[%s5451_s16 + $0x10] sm:$0xff]   ;;  %vm2396_vm1 = vcmask 261120  }
 0x1d4   : > { %4296 = vmatprep.subr.bf16.mxu0 %v5128_v15  ;;  %4316 = vmatprep.subr.bf16.mxu1 %v5128_v15  ;;  %v4754_v16 = vld [vmem:[%s5451_s16 + $0x40] sm:$0xff]   ;;  %v4756_v18 = vld [vmem:[%s5451_s16 + $0x48] sm:$0xff]   ;;  %v4758_v20 = vld [vmem:[%s5451_s16 + $0x50] sm:$0xff]   ;;  %vm2646_vm2 = vcmask 1043456   ;;  %vm2590_vm3 = vcmask 64512   ;;  %s6170_s18 = sld [smem:[#allocation29_spill]] }
 0x1d5   : > { %4297 = vmatpush3.bf16.msra.mxu0 %v4753_v14  ;;  %4312 = vmatprep.mubr.msk.bf16.mxu0 %vm5129_vm0, %v5128_v15  ;;  %v4759_v21 = vld [vmem:[%s5451_s16 + $0x18] sm:$0xff]   ;;  %v4761_v23 = vld [vmem:[%s5451_s16 + $0x20] sm:$0xff]   ;;  %v4763_v25 = vld [vmem:[%s5451_s16 + $0x28] sm:$0xff]   ;;  %s6171_s29 = sld [smem:[#allocation41_spill]]  ;;  %s6173_s3 = sld [smem:[#allocation42_spill]] }
 0x1d6   : > { %4317 = vmatpush3.bf16.msra.mxu1 %v4754_v16  ;;  %4298 = vmatprep.subr.bf16.mxu0 %v5128_v15  ;;  %v4760_v22 = vld [vmem:[%s5451_s16 + $0x58] sm:$0xff]   ;;  %v4762_v24 = vld [vmem:[%s5451_s16 + $0x60] sm:$0xff]   ;;  %v4764_v26 = vld [vmem:[%s5451_s16 + $0x68] sm:$0xff]   ;;  %s6175_s9 = sld [smem:[#allocation43_spill]]  ;;  %p4111_p1 = scmp.ne.s32.totalorder %s5106_s23, 1 }
 0x1d7   : > { %4318 = vmatprep.subr.bf16.mxu1 %v5128_v15  ;;  %4332 = vmatprep.mubr.msk.bf16.mxu1 %vm5129_vm0, %v5128_v15  ;;  %v4765_v27 = vld [vmem:[%s5451_s16 + $0x30] sm:$0xff]   ;;  %v4767_v29 = vld [vmem:[%s5451_s16 + $0x38] sm:$0xff]   ;;  %v4769_v33 = vld [vmem:[%s5451_s16 + $0x80] sm:$0xff]   ;;  %vm5133_vm6 = vmmov (!%p4111_p1), 0  }
 0x1d8   : > { %v4766_v28 = vld [vmem:[%s5451_s16 + $0x70] sm:$0xff]   ;;  %v4768_v31 = vld [vmem:[%s5451_s16 + $0x78] sm:$0xff]   ;;  %v4770_v34 = vld [vmem:[%s5451_s16 + $0xc0] sm:$0xff]  }
 0x1d9   : > { %4299 = vmatpush3.bf16.msra.mxu0 %v4755_v17  ;;  %v1054_v30 = vld [vmem:[#allocation2] sm:$0xff]  ;;  %v4771_v35 = vld [vmem:[%s5451_s16 + $0x88] sm:$0xff]   ;;  %v4773_v37 = vld [vmem:[%s5451_s16 + $0x90] sm:$0xff]  }
 0x1da   : > { %4319 = vmatpush3.bf16.msra.mxu1 %v4756_v18  ;;  %4300 = vmatprep.subr.bf16.mxu0 %v5128_v15  ;;  %v5594_v32 = vpack.c.bf16 %v1054_v30, %v1054_v30  ;;  %v4772_v36 = vld [vmem:[%s5451_s16 + $0xc8] sm:$0xff]   ;;  %v4774_v38 = vld [vmem:[%s5451_s16 + $0xd0] sm:$0xff]   ;;  %v4775_v39 = vld [vmem:[%s5451_s16 + $0x98] sm:$0xff]  }
 0x1db   : > { %4320 = vmatprep.subr.bf16.mxu1 %v5128_v15  ;;  %v4776_v40 = vld [vmem:[%s5451_s16 + $0xd8] sm:$0xff]   ;;  %v4777_v41 = vld [vmem:[%s5451_s16 + $0xa0] sm:$0xff]   ;;  %v4779_v43 = vld [vmem:[%s5451_s16 + $0xa8] sm:$0xff]   ;;  %s6172_s27 = scalar_lea.vmem %s6171_s29, %s5468_s24  ;;  %s6174_s17 = scalar_lea.vmem %s6173_s3, %s5468_s24 }
 0x1dc   : > { %v4778_v42 = vld [vmem:[%s5451_s16 + $0xe0] sm:$0xff]   ;;  %v4780_v44 = vld [vmem:[%s5451_s16 + $0xe8] sm:$0xff]   ;;  %v4781_v45 = vld [vmem:[%s5451_s16 + $0xb0] sm:$0xff]   ;;  %s6176_s1 = scalar_lea.vmem %s6175_s9, %s5468_s24 }
 0x1dd   : > { %4301 = vmatpush3.bf16.msra.mxu0 %v4757_v19  ;;  %v4782_v46 = vld [vmem:[%s5451_s16 + $0xf0] sm:$0xff]   ;;  %v4783_v47 = vld [vmem:[%s5451_s16 + $0xb8] sm:$0xff]   ;;  %v4785_v49 = vld [vmem:[%s5457_s22] sm:$0xff]  }
 0x1de   : > { %4321 = vmatpush3.bf16.msra.mxu1 %v4758_v20  ;;  %4302 = vmatprep.subr.bf16.mxu0 %v5128_v15  ;;  %v4784_v48 = vld [vmem:[%s5451_s16 + $0xf8] sm:$0xff]   ;;  %v4786_v50 = vld [vmem:[%s5457_s22 + $0x40] sm:$0xff]   ;;  %v4787_v51 = vld [vmem:[%s5457_s22 + $0x8] sm:$0xff]   ;;  %s6167_s16 = sld [smem:[#allocation27_spill]] }
 0x1df   : > { %4322 = vmatprep.subr.bf16.mxu1 %v5128_v15  ;;  %v4788_v52 = vld [vmem:[%s5457_s22 + $0x48] sm:$0xff]   ;;  %v4789_v53 = vld [vmem:[%s5457_s22 + $0x10] sm:$0xff]   ;;  %v4791_v55 = vld [vmem:[%s5457_s22 + $0x18] sm:$0xff]  }
 0x1e0   : > { %v4790_v54 = vld [vmem:[%s5457_s22 + $0x50] sm:$0xff]   ;;  %v4792_v56 = vld [vmem:[%s5457_s22 + $0x58] sm:$0xff]   ;;  %v4793_v57 = vld [vmem:[%s5457_s22 + $0x20] sm:$0xff]  }
 0x1e1   : > { %4303 = vmatpush3.bf16.msra.mxu0 %v4759_v21  ;;  %v4794_v58 = vld [vmem:[%s5457_s22 + $0x60] sm:$0xff]   ;;  %v4795_v59 = vld [vmem:[%s5457_s22 + $0x28] sm:$0xff]   ;;  %v4797_v61 = vld [vmem:[%s5457_s22 + $0x30] sm:$0xff]  }
 0x1e2   : > { %4323 = vmatpush3.bf16.msra.mxu1 %v4760_v22  ;;  %4304 = vmatprep.subr.bf16.mxu0 %v5128_v15  ;;  %v4796_v60 = vld [vmem:[%s5457_s22 + $0x68] sm:$0xff]   ;;  %v4798_v62 = vld [vmem:[%s5457_s22 + $0x70] sm:$0xff]   ;;  %v4799_v63 = vld [vmem:[%s5457_s22 + $0x38] sm:$0xff]  }
 0x1e3   : > { %4324 = vmatprep.subr.bf16.mxu1 %v5128_v15  ;;  %v4800_v0 = vld [vmem:[%s5457_s22 + $0x78] sm:$0xff]   ;;  %v4801_v1 = vld [vmem:[%s5457_s22 + $0x80] sm:$0xff]   ;;  %v4803_v3 = vld [vmem:[%s5457_s22 + $0x88] sm:$0xff]  }
 0x1e4   : > { %v4802_v2 = vld [vmem:[%s5457_s22 + $0xc0] sm:$0xff]   ;;  %v4804_v4 = vld [vmem:[%s5457_s22 + $0xc8] sm:$0xff]   ;;  %v4805_v5 = vld [vmem:[%s5457_s22 + $0x90] sm:$0xff]  }
 0x1e5   : > { %4305 = vmatpush3.bf16.msra.mxu0 %v4761_v23  ;;  %v4806_v6 = vld [vmem:[%s5457_s22 + $0xd0] sm:$0xff]   ;;  %v4807_v7 = vld [vmem:[%s5457_s22 + $0x98] sm:$0xff]   ;;  %v4809_v9 = vld [vmem:[%s5457_s22 + $0xa0] sm:$0xff]  }
 0x1e6   : > { %4325 = vmatpush3.bf16.msra.mxu1 %v4762_v24  ;;  %4306 = vmatprep.subr.bf16.mxu0 %v5128_v15  ;;  %v4808_v8 = vld [vmem:[%s5457_s22 + $0xd8] sm:$0xff]   ;;  %v4810_v10 = vld [vmem:[%s5457_s22 + $0xe0] sm:$0xff]   ;;  %v4811_v11 = vld [vmem:[%s5457_s22 + $0xa8] sm:$0xff]  }
 0x1e7   : > { %4326 = vmatprep.subr.bf16.mxu1 %v5128_v15  ;;  %v4812_v12 = vld [vmem:[%s5457_s22 + $0xe8] sm:$0xff]   ;;  %v4813_v13 = vld [vmem:[%s5457_s22 + $0xb0] sm:$0xff]   ;;  %v4815_v16 = vld [vmem:[%s5457_s22 + $0xb8] sm:$0xff]  }
 0x1e8   : > { %v4814_v14 = vld [vmem:[%s5457_s22 + $0xf0] sm:$0xff]   ;;  %v4816_v17 = vld [vmem:[%s5457_s22 + $0xf8] sm:$0xff]   ;;  %v4819_v20 = vld [vmem:[%s5493_s2 + $0x8] sm:$0xff]   ;;  %s6169_s22 = sld [smem:[#allocation28_spill]] }
 0x1e9   : > { %4307 = vmatpush3.bf16.msra.mxu0 %v4763_v25  ;;  %v4817_v18 = vld [vmem:[%s5493_s2] sm:$0xff]   ;;  %v4820_v21 = vld [vmem:[%s5493_s2 + $0x48] sm:$0xff]   ;;  %v4821_v22 = vld [vmem:[%s5493_s2 + $0x10] sm:$0xff]  }
 0x1ea   : > { %4327 = vmatpush3.bf16.msra.mxu1 %v4764_v26  ;;  %4308 = vmatprep.subr.bf16.mxu0 %v5128_v15  ;;  %v4818_v19 = vld [vmem:[%s5493_s2 + $0x40] sm:$0xff]   ;;  %v4822_v23 = vld [vmem:[%s5493_s2 + $0x50] sm:$0xff]   ;;  %v4823_v24 = vld [vmem:[%s5493_s2 + $0x18] sm:$0xff]  }
 0x1eb   : > { %4328 = vmatprep.subr.bf16.mxu1 %v5128_v15  ;;  %v4824_v25 = vld [vmem:[%s5493_s2 + $0x58] sm:$0xff]   ;;  %v4825_v26 = vld [vmem:[%s5493_s2 + $0x20] sm:$0xff]   ;;  %v4829_v30 = vld [vmem:[%s5493_s2 + $0x30] sm:$0xff]  }
 0x1ed   : > { %4309 = vmatpush3.bf16.msra.mxu0 %v4765_v27  ;;  %v4826_v27 = vld [vmem:[%s5493_s2 + $0x60] sm:$0xff]  }
 0x1ee   : > { %4329 = vmatpush3.bf16.msra.mxu1 %v4766_v28  ;;  %4310 = vmatprep.subr.bf16.mxu0 %v5128_v15  ;;  %v4827_v28 = vld [vmem:[%s5493_s2 + $0x28] sm:$0xff]  }
 0x1ef   : > { %4330 = vmatprep.subr.bf16.mxu1 %v5128_v15 }
 0x1f1   : > { %4311 = vmatpush3.bf16.msra.mxu0 %v4767_v29  ;;  %v4828_v29 = vld [vmem:[%s5493_s2 + $0x68] sm:$0xff]  }
 0x1f2   : > { %4331 = vmatpush3.bf16.msra.mxu1 %v4768_v31  ;;  %4336 = vmatprep.subr.bf16.mxu0 %v5128_v15  ;;  %v4830_v31 = vld [vmem:[%s5493_s2 + $0x70] sm:$0xff]  }
 0x1f3   : > { %4356 = vmatprep.subr.bf16.mxu1 %v5128_v15 }
 0x1f4   : > { %4313 = vmatmul.mubr.bf16.vlgmr.msra.gmra.mrb[0].mxu0 %v5594_v32 }
 0x1f5   : > { %4333 = vmatmul.mubr.bf16.vlgmr.msra.gmra.mrb[0].mxu1 %v5594_v32  ;;  %4337 = vmatpush3.bf16.msra.mxu0 %v4769_v33  ;;  %v4831_v33 = vld [vmem:[%s5493_s2 + $0x38] sm:$0xff]  }
 0x1f6   : > { %4357 = vmatpush3.bf16.msra.mxu1 %v4770_v34  ;;  %4338 = vmatprep.subr.bf16.mxu0 %v5128_v15  ;;  %v4832_v34 = vld [vmem:[%s5493_s2 + $0x78] sm:$0xff]  }
 0x1f7   : > { %4358 = vmatprep.subr.bf16.mxu1 %v5128_v15  ;;  %4352 = vmatprep.mubr.msk.bf16.mxu0 %vm5129_vm0, %v5128_v15 }
 0x1f8   : > { %4372 = vmatprep.mubr.msk.bf16.mxu1 %vm5129_vm0, %v5128_v15 }
 0x1f9   : > { %4339 = vmatpush3.bf16.msra.mxu0 %v4771_v35  ;;  %v4833_v35 = vld [vmem:[%s5493_s2 + $0x80] sm:$0xff]  }
 0x1fa   : > { %4359 = vmatpush3.bf16.msra.mxu1 %v4772_v36  ;;  %4340 = vmatprep.subr.bf16.mxu0 %v5128_v15  ;;  %v4834_v36 = vld [vmem:[%s5493_s2 + $0xc0] sm:$0xff]  }
 0x1fb   : > { %4360 = vmatprep.subr.bf16.mxu1 %v5128_v15 }
 0x1fd   : > { %4341 = vmatpush3.bf16.msra.mxu0 %v4773_v37  ;;  %v4835_v37 = vld [vmem:[%s5493_s2 + $0x88] sm:$0xff]  }
 0x1fe   : > { %4361 = vmatpush3.bf16.msra.mxu1 %v4774_v38  ;;  %4342 = vmatprep.subr.bf16.mxu0 %v5128_v15  ;;  %v4836_v38 = vld [vmem:[%s5493_s2 + $0xc8] sm:$0xff]  }
 0x1ff   : > { %4362 = vmatprep.subr.bf16.mxu1 %v5128_v15 }
 0x201   : > { %4343 = vmatpush3.bf16.msra.mxu0 %v4775_v39  ;;  %v4837_v39 = vld [vmem:[%s5493_s2 + $0x90] sm:$0xff]  }
 0x202   : > { %4363 = vmatpush3.bf16.msra.mxu1 %v4776_v40  ;;  %4344 = vmatprep.subr.bf16.mxu0 %v5128_v15  ;;  %v4838_v40 = vld [vmem:[%s5493_s2 + $0xd0] sm:$0xff]  }
 0x203   : > { %4364 = vmatprep.subr.bf16.mxu1 %v5128_v15 }
 0x205   : > { %4345 = vmatpush3.bf16.msra.mxu0 %v4777_v41  ;;  %v4839_v41 = vld [vmem:[%s5493_s2 + $0x98] sm:$0xff]  }
 0x206   : > { %4365 = vmatpush3.bf16.msra.mxu1 %v4778_v42  ;;  %4346 = vmatprep.subr.bf16.mxu0 %v5128_v15  ;;  %v4840_v42 = vld [vmem:[%s5493_s2 + $0xd8] sm:$0xff]  }
 0x207   : > { %4366 = vmatprep.subr.bf16.mxu1 %v5128_v15 }
 0x209   : > { %4347 = vmatpush3.bf16.msra.mxu0 %v4779_v43  ;;  %v4841_v43 = vld [vmem:[%s5493_s2 + $0xa0] sm:$0xff]  }
 0x20a   : > { %4367 = vmatpush3.bf16.msra.mxu1 %v4780_v44  ;;  %4348 = vmatprep.subr.bf16.mxu0 %v5128_v15  ;;  %v4842_v44 = vld [vmem:[%s5493_s2 + $0xe0] sm:$0xff]  }
 0x20b   : > { %4368 = vmatprep.subr.bf16.mxu1 %v5128_v15 }
 0x20d   : > { %4349 = vmatpush3.bf16.msra.mxu0 %v4781_v45  ;;  %v4843_v45 = vld [vmem:[%s5493_s2 + $0xa8] sm:$0xff]  }
 0x20e   : > { %4369 = vmatpush3.bf16.msra.mxu1 %v4782_v46  ;;  %4350 = vmatprep.subr.bf16.mxu0 %v5128_v15  ;;  %v4844_v46 = vld [vmem:[%s5493_s2 + $0xe8] sm:$0xff]  }
 0x20f   : > { %4370 = vmatprep.subr.bf16.mxu1 %v5128_v15 }
 0x211   : > { %4351 = vmatpush3.bf16.msra.mxu0 %v4783_v47  ;;  %v4845_v47 = vld [vmem:[%s5493_s2 + $0xb0] sm:$0xff]  }
 0x212   : > { %4371 = vmatpush3.bf16.msra.mxu1 %v4784_v48  ;;  %4376 = vmatprep.subr.bf16.mxu0 %v5128_v15  ;;  %v4846_v48 = vld [vmem:[%s5493_s2 + $0xf0] sm:$0xff]  }
 0x213   : > { %4396 = vmatprep.subr.bf16.mxu1 %v5128_v15 }
 0x214   : > { %4353 = vmatmul.mubr.bf16.vlgmr.msra.gmra.mrb[4].mxu0 %v5594_v32 }
 0x215   : > { %4373 = vmatmul.mubr.bf16.vlgmr.msra.gmra.mrb[4].mxu1 %v5594_v32  ;;  %4377 = vmatpush3.bf16.msra.mxu0 %v4785_v49  ;;  %v4847_v49 = vld [vmem:[%s5493_s2 + $0xb8] sm:$0xff]  }
 0x216   : > { %4397 = vmatpush3.bf16.msra.mxu1 %v4786_v50  ;;  %4378 = vmatprep.subr.bf16.mxu0 %v5128_v15  ;;  %v4848_v50 = vld [vmem:[%s5493_s2 + $0xf8] sm:$0xff]  }
 0x217   : > { %4398 = vmatprep.subr.bf16.mxu1 %v5128_v15  ;;  %4392 = vmatprep.mubr.msk.bf16.mxu0 %vm5129_vm0, %v5128_v15 }
 0x218   : > { %4412 = vmatprep.mubr.msk.bf16.mxu1 %vm5129_vm0, %v5128_v15 }
 0x219   : > { %4379 = vmatpush3.bf16.msra.mxu0 %v4787_v51 }
 0x21a   : > { %4399 = vmatpush3.bf16.msra.mxu1 %v4788_v52  ;;  %4380 = vmatprep.subr.bf16.mxu0 %v5128_v15 }
 0x21b   : > { %4400 = vmatprep.subr.bf16.mxu1 %v5128_v15 }
 0x21d   : > { %4381 = vmatpush3.bf16.msra.mxu0 %v4789_v53 }
 0x21e   : > { %4401 = vmatpush3.bf16.msra.mxu1 %v4790_v54  ;;  %4382 = vmatprep.subr.bf16.mxu0 %v5128_v15 }
 0x21f   : > { %4402 = vmatprep.subr.bf16.mxu1 %v5128_v15 }
 0x221   : > { %4383 = vmatpush3.bf16.msra.mxu0 %v4791_v55 }
 0x222   : > { %4403 = vmatpush3.bf16.msra.mxu1 %v4792_v56  ;;  %4384 = vmatprep.subr.bf16.mxu0 %v5128_v15 }
 0x223   : > { %4404 = vmatprep.subr.bf16.mxu1 %v5128_v15 }
 0x225   : > { %4385 = vmatpush3.bf16.msra.mxu0 %v4793_v57 }
 0x226   : > { %4405 = vmatpush3.bf16.msra.mxu1 %v4794_v58  ;;  %4386 = vmatprep.subr.bf16.mxu0 %v5128_v15 }
 0x227   : > { %4406 = vmatprep.subr.bf16.mxu1 %v5128_v15 }
 0x229   : > { %4387 = vmatpush3.bf16.msra.mxu0 %v4795_v59 }
 0x22a   : > { %4407 = vmatpush3.bf16.msra.mxu1 %v4796_v60  ;;  %4388 = vmatprep.subr.bf16.mxu0 %v5128_v15 }
 0x22b   : > { %4408 = vmatprep.subr.bf16.mxu1 %v5128_v15 }
 0x22d   : > { %4389 = vmatpush3.bf16.msra.mxu0 %v4797_v61 }
 0x22e   : > { %4409 = vmatpush3.bf16.msra.mxu1 %v4798_v62  ;;  %4390 = vmatprep.subr.bf16.mxu0 %v5128_v15 }
 0x22f   : > { %4410 = vmatprep.subr.bf16.mxu1 %v5128_v15 }
 0x231   : > { %4391 = vmatpush3.bf16.msra.mxu0 %v4799_v63 }
 0x232   : > { %4411 = vmatpush3.bf16.msra.mxu1 %v4800_v0  ;;  %4416 = vmatprep.subr.bf16.mxu0 %v5128_v15 }
 0x233   : > { %4436 = vmatprep.subr.bf16.mxu1 %v5128_v15 }
 0x234   : > { %4393 = vmatmul.mubr.bf16.vlgmr.msra.gmra.mrb[8].mxu0 %v5594_v32 }
 0x235   : > { %4413 = vmatmul.mubr.bf16.vlgmr.msra.gmra.mrb[8].mxu1 %v5594_v32  ;;  %4417 = vmatpush3.bf16.msra.mxu0 %v4801_v1 }
 0x236   : > { %4437 = vmatpush3.bf16.msra.mxu1 %v4802_v2  ;;  %4418 = vmatprep.subr.bf16.mxu0 %v5128_v15  ;;  %v3981_v2 = vld [vmem:[%s5488_s20] ss:$0 sm:$0xff] }
 0x237   : > { %4438 = vmatprep.subr.bf16.mxu1 %v5128_v15  ;;  %4432 = vmatprep.mubr.msk.bf16.mxu0 %vm5129_vm0, %v5128_v15 }
 0x238   : > { %4452 = vmatprep.mubr.msk.bf16.mxu1 %vm5129_vm0, %v5128_v15 }
 0x239   : > { %4419 = vmatpush3.bf16.msra.mxu0 %v4803_v3  ;;  %v3982_v3 = vld [vmem:[%s5488_s20 + $0x1] ss:$0 sm:$0xff] }
 0x23a   : > { %4439 = vmatpush3.bf16.msra.mxu1 %v4804_v4  ;;  %4420 = vmatprep.subr.bf16.mxu0 %v5128_v15 }
 0x23b   : > { %4440 = vmatprep.subr.bf16.mxu1 %v5128_v15 }
 0x23d   : > { %4421 = vmatpush3.bf16.msra.mxu0 %v4805_v5 }
 0x23e   : > { %4441 = vmatpush3.bf16.msra.mxu1 %v4806_v6  ;;  %4422 = vmatprep.subr.bf16.mxu0 %v5128_v15 }
 0x23f   : > { %4442 = vmatprep.subr.bf16.mxu1 %v5128_v15 }
 0x241   : > { %4423 = vmatpush3.bf16.msra.mxu0 %v4807_v7 }
 0x242   : > { %4443 = vmatpush3.bf16.msra.mxu1 %v4808_v8  ;;  %4424 = vmatprep.subr.bf16.mxu0 %v5128_v15 }
 0x243   : > { %4444 = vmatprep.subr.bf16.mxu1 %v5128_v15 }
 0x245   : > { %4425 = vmatpush3.bf16.msra.mxu0 %v4809_v9 }
 0x246   : > { %4445 = vmatpush3.bf16.msra.mxu1 %v4810_v10  ;;  %4426 = vmatprep.subr.bf16.mxu0 %v5128_v15 }
 0x247   : > { %4446 = vmatprep.subr.bf16.mxu1 %v5128_v15 }
 0x249   : > { %4427 = vmatpush3.bf16.msra.mxu0 %v4811_v11 }
 0x24a   : > { %4447 = vmatpush3.bf16.msra.mxu1 %v4812_v12  ;;  %4428 = vmatprep.subr.bf16.mxu0 %v5128_v15 }
 0x24b   : > { %4448 = vmatprep.subr.bf16.mxu1 %v5128_v15 }
 0x24d   : > { %4429 = vmatpush3.bf16.msra.mxu0 %v4813_v13 }
 0x24e   : > { %4449 = vmatpush3.bf16.msra.mxu1 %v4814_v14  ;;  %4430 = vmatprep.subr.bf16.mxu0 %v5128_v15  ;;  %v3945_v14 = vld [vmem:[%s5483_s4] ss:$0 sm:$0xff] }
 0x24f   : > { %4450 = vmatprep.subr.bf16.mxu1 %v5128_v15 }
 0x251   : > { %4431 = vmatpush3.bf16.msra.mxu0 %v4815_v16 }
 0x252   : > { %4451 = vmatpush3.bf16.msra.mxu1 %v4816_v17  ;;  %4456 = vmatprep.subr.bf16.mxu0 %v5128_v15 }
 0x253   : > { %4476 = vmatprep.subr.bf16.mxu1 %v5128_v15 }
 0x254   : > { %4433 = vmatmul.mubr.bf16.vlgmr.msra.gmra.mrb[12].mxu0 %v5594_v32 }
 0x255   : > { %4453 = vmatmul.mubr.bf16.vlgmr.msra.gmra.mrb[12].mxu1 %v5594_v32  ;;  %4457 = vmatpush3.bf16.msra.mxu0 %v4817_v18  ;;  %v3946_v18 = vld [vmem:[%s5483_s4 + $0x1] ss:$0 sm:$0xff] }
 0x256   : > { %4477 = vmatpush3.bf16.msra.mxu1 %v4818_v19  ;;  %4458 = vmatprep.subr.bf16.mxu0 %v5128_v15 }
 0x257   : > { %4478 = vmatprep.subr.bf16.mxu1 %v5128_v15  ;;  %4472 = vmatprep.mubr.msk.bf16.mxu0 %vm5129_vm0, %v5128_v15 }
 0x258   : > { %4492 = vmatprep.mubr.msk.bf16.mxu1 %vm5129_vm0, %v5128_v15 }
 0x259   : > { %4459 = vmatpush3.bf16.msra.mxu0 %v4819_v20 }
 0x25a   : > { %4479 = vmatpush3.bf16.msra.mxu1 %v4820_v21  ;;  %4460 = vmatprep.subr.bf16.mxu0 %v5128_v15 }
 0x25b   : > { %4480 = vmatprep.subr.bf16.mxu1 %v5128_v15 }
 0x25d   : > { %4461 = vmatpush3.bf16.msra.mxu0 %v4821_v22 }
 0x25e   : > { %4481 = vmatpush3.bf16.msra.mxu1 %v4822_v23  ;;  %4462 = vmatprep.subr.bf16.mxu0 %v5128_v15 }
 0x25f   : > { %4482 = vmatprep.subr.bf16.mxu1 %v5128_v15 }
 0x261   : > { %4463 = vmatpush3.bf16.msra.mxu0 %v4823_v24 }
 0x262   : > { %4483 = vmatpush3.bf16.msra.mxu1 %v4824_v25  ;;  %4464 = vmatprep.subr.bf16.mxu0 %v5128_v15  ;;  %v3983_v25 = vld [vmem:[%s5488_s20 + $0x2] ss:$0 sm:$0xff] }
 0x263   : > { %4484 = vmatprep.subr.bf16.mxu1 %v5128_v15 }
 0x265   : > { %4465 = vmatpush3.bf16.msra.mxu0 %v4825_v26  ;;  %v3984_v26 = vld [vmem:[%s5488_s20 + $0x3] ss:$0 sm:$0xff] }
 0x266   : > { %4485 = vmatpush3.bf16.msra.mxu1 %v4826_v27  ;;  %4466 = vmatprep.subr.bf16.mxu0 %v5128_v15 }
 0x267   : > { %4486 = vmatprep.subr.bf16.mxu1 %v5128_v15 }
 0x269   : > { %4467 = vmatpush3.bf16.msra.mxu0 %v4827_v28 }
 0x26a   : > { %4487 = vmatpush3.bf16.msra.mxu1 %v4828_v29  ;;  %4468 = vmatprep.subr.bf16.mxu0 %v5128_v15 }
 0x26b   : > { %4488 = vmatprep.subr.bf16.mxu1 %v5128_v15 }
 0x26d   : > { %4469 = vmatpush3.bf16.msra.mxu0 %v4829_v30 }
 0x26e   : > { %4489 = vmatpush3.bf16.msra.mxu1 %v4830_v31  ;;  %4470 = vmatprep.subr.bf16.mxu0 %v5128_v15 }
 0x26f   : > { %4490 = vmatprep.subr.bf16.mxu1 %v5128_v15 }
 0x271   : > { %4471 = vmatpush3.bf16.msra.mxu0 %v4831_v33 }
 0x272   : > { %4491 = vmatpush3.bf16.msra.mxu1 %v4832_v34  ;;  %4496 = vmatprep.subr.bf16.mxu0 %v5128_v15 }
 0x273   : > { %4516 = vmatprep.subr.bf16.mxu1 %v5128_v15 }
 0x274   : > { %4473 = vmatmul.mubr.bf16.vlgmr.msra.gmra.mrb[16].mxu0 %v5594_v32 }
 0x275   : > { %4493 = vmatmul.mubr.bf16.vlgmr.msra.gmra.mrb[16].mxu1 %v5594_v32  ;;  %4497 = vmatpush3.bf16.msra.mxu0 %v4833_v35 }
 0x276   : > { %4517 = vmatpush3.bf16.msra.mxu1 %v4834_v36  ;;  %4498 = vmatprep.subr.bf16.mxu0 %v5128_v15 }
 0x277   : > { %4518 = vmatprep.subr.bf16.mxu1 %v5128_v15  ;;  %4512 = vmatprep.mubr.msk.bf16.mxu0 %vm5129_vm0, %v5128_v15 }
 0x278   : > { %4532 = vmatprep.mubr.msk.bf16.mxu1 %vm5129_vm0, %v5128_v15 }
 0x279   : > { %4499 = vmatpush3.bf16.msra.mxu0 %v4835_v37 }
 0x27a   : > { %4519 = vmatpush3.bf16.msra.mxu1 %v4836_v38  ;;  %4500 = vmatprep.subr.bf16.mxu0 %v5128_v15  ;;  %v3947_v38 = vld [vmem:[%s5483_s4 + $0x2] ss:$0 sm:$0xff] }
 0x27b   : > { %4520 = vmatprep.subr.bf16.mxu1 %v5128_v15 }
 0x27d   : > { %4501 = vmatpush3.bf16.msra.mxu0 %v4837_v39 }
 0x27e   : > { %4521 = vmatpush3.bf16.msra.mxu1 %v4838_v40  ;;  %4502 = vmatprep.subr.bf16.mxu0 %v5128_v15 }
 0x27f   : > { %4522 = vmatprep.subr.bf16.mxu1 %v5128_v15 }
 0x281   : > { %4503 = vmatpush3.bf16.msra.mxu0 %v4839_v41  ;;  %v3948_v41 = vld [vmem:[%s5483_s4 + $0x3] ss:$0 sm:$0xff]  ;;  %s6168_s4 = sld [smem:[#allocation26_spill]] }
 0x282   : > { %4523 = vmatpush3.bf16.msra.mxu1 %v4840_v42  ;;  %4504 = vmatprep.subr.bf16.mxu0 %v5128_v15 }
 0x283   : > { %4524 = vmatprep.subr.bf16.mxu1 %v5128_v15 }
 0x285   : > { %4505 = vmatpush3.bf16.msra.mxu0 %v4841_v43 }
 0x286   : > { %4525 = vmatpush3.bf16.msra.mxu1 %v4842_v44  ;;  %4506 = vmatprep.subr.bf16.mxu0 %v5128_v15 }
 0x287   : > { %4526 = vmatprep.subr.bf16.mxu1 %v5128_v15 }
 0x289   : > { %4507 = vmatpush3.bf16.msra.mxu0 %v4843_v45 }
 0x28a   : > { %4527 = vmatpush3.bf16.msra.mxu1 %v4844_v46  ;;  %4508 = vmatprep.subr.bf16.mxu0 %v5128_v15 }
 0x28b   : > { %4528 = vmatprep.subr.bf16.mxu1 %v5128_v15 }
 0x28d   : > { %4509 = vmatpush3.bf16.msra.mxu0 %v4845_v47 }
 0x28e   : > { %4529 = vmatpush3.bf16.msra.mxu1 %v4846_v48  ;;  %4510 = vmatprep.subr.bf16.mxu0 %v5128_v15  ;;  %v4017_v48 = vld [vmem:[%s6167_s16] ss:$0 sm:$0xff] }
 0x28f   : > { %4530 = vmatprep.subr.bf16.mxu1 %v5128_v15 }
 0x291   : > { %4511 = vmatpush3.bf16.msra.mxu0 %v4847_v49  ;;  %v4018_v49 = vld [vmem:[%s6167_s16 + $0x1] ss:$0 sm:$0xff] }
 0x292   : > { %4531 = vmatpush3.bf16.msra.mxu1 %v4848_v50  ;;  %4536 = vmatprep.subr.bf16.mxu0 %v5128_v15 }
 0x293   : > { %4542 = vmatprep.subr.bf16.mxu1 %v5128_v15 }
 0x294   : > { %4513 = vmatmul.mubr.bf16.vlgmr.msra.gmra.mrb[20].mxu0 %v5594_v32 }
 0x295   : > { %4533 = vmatmul.mubr.bf16.vlgmr.msra.gmra.mrb[20].mxu1 %v5594_v32  ;;  %4538 = vmatprep.mubr.msk.bf16.mxu0 %vm5129_vm0, %v5128_v15 }
 0x296   : > { %4544 = vmatprep.mubr.msk.bf16.mxu1 %vm5129_vm0, %v5128_v15 }
 0x2c7   : > { %v1230_v51 = vpop.f32.mrb[0].mxu0 }
 0x2c8   : > { %v4314_v52 = vpop.f32.mrb[1].mxu0  ;;  %v1318_v53 = vpop.f32.mrb[0].mxu1  ;;  %v1231_v21 = vadd.f32 %v3945_v14, %v1230_v51 }
 0x2c9   : > { %v1233_v54 = vpop.f32.mrb[2].mxu0  ;;  %v4334_v55 = vpop.f32.mrb[1].mxu1  ;;  %v1319_v22 = vadd.f32 %v3946_v18, %v1318_v53 }
 0x2ca   : > { %v4315_v56 = vpop.f32.mrb[3].mxu0  ;;  %v1321_v57 = vpop.f32.mrb[2].mxu1  ;;  %v2388_v23 = vpack.c.bf16 %v1231_v21, %v1231_v21 }
 0x2cb   : > { %v4335_v58 = vpop.f32.mrb[3].mxu1  ;;  %v2389_v24 = vpack.c.bf16 %v1319_v22, %v1319_v22 }
 0x2e7   : > { %v1406_v59 = vpop.f32.mrb[4].mxu0 }
 0x2e8   : > { %v4354_v60 = vpop.f32.mrb[5].mxu0  ;;  %v1494_v61 = vpop.f32.mrb[4].mxu1  ;;  %v1407_v44 = vadd.f32 %v3947_v38, %v1406_v59 }
 0x2e9   : > { %v1409_v32 = vpop.f32.mrb[6].mxu0  ;;  %v4374_v62 = vpop.f32.mrb[5].mxu1  ;;  %v1495_v45 = vadd.f32 %v3948_v41, %v1494_v61 }
 0x2ea   : > { %v4355_v63 = vpop.f32.mrb[7].mxu0  ;;  %v1497_v0 = vpop.f32.mrb[6].mxu1  ;;  %v2390_v46 = vpack.c.bf16 %v1407_v44, %v1407_v44 }
 0x2eb   : > { %v4375_v1 = vpop.f32.mrb[7].mxu1  ;;  %v2391_v47 = vpack.c.bf16 %v1495_v45, %v1495_v45  ;;  %v4019_v63 = vld [vmem:[%s6167_s16 + $0x2] ss:$0 sm:$0xff]  ;;  %v4020_v0 = vld [vmem:[%s6167_s16 + $0x3] ss:$0 sm:$0xff] }
 0x307   : > { %v1674_v4 = vpop.f32.mrb[8].mxu0 }
 0x308   : > { %v1675_v5 = vadd.f32 %v3981_v2, %v1674_v4  ;;  %v1762_v6 = vpop.f32.mrb[8].mxu1  ;;  %v4394_v7 = vpop.f32.mrb[9].mxu0 }
 0x309   : > { %v1763_v8 = vadd.f32 %v3982_v3, %v1762_v6  ;;  %v1677_v9 = vpop.f32.mrb[10].mxu0  ;;  %v4414_v10 = vpop.f32.mrb[9].mxu1 }
 0x30a   : > { %v2392_v11 = vpack.c.bf16 %v1675_v5, %v1675_v5  ;;  %v4395_v12 = vpop.f32.mrb[11].mxu0  ;;  %v1765_v13 = vpop.f32.mrb[10].mxu1 }
 0x30b   : > { %v2393_v16 = vpack.c.bf16 %v1763_v8, %v1763_v8  ;;  %v4415_v17 = vpop.f32.mrb[11].mxu1 }
 0x30c   : > { %v2401_v19 = vsel %vm2396_vm1, %v2392_v11, 0  ;;  %v2585_v17 = vld [vmem:[%s6168_s4] sm:$0xff] }
 0x30d   : > { %v2447_v20 = vsel %vm2396_vm1, %v2393_v16, 0  ;;  %4537 = vmatpush3.bf16.xpose.msra.mxu0 %v2401_v19 }
 0x30e   : > { %4543 = vmatpush3.bf16.xpose.msra.mxu1 %v2447_v20  ;;  %4548 = vmatprep.subr.bf16.mxu0 %v5128_v15 }
 0x30f   : > { %4554 = vmatprep.subr.bf16.mxu1 %v5128_v15 }
 0x314   : > { %4539 = vmatmul.mubr.msk.bf16.vlgmr.msra.gmra.mrb[24].mxu0 %vm2396_vm1, %v2388_v23 }
 0x315   : > { %4545 = vmatmul.mubr.msk.bf16.vlgmr.msra.gmra.mrb[24].mxu1 %vm2396_vm1, %v2389_v24  ;;  %4550 = vmatprep.mubr.msk.bf16.mxu0 %vm5129_vm0, %v5128_v15 }
 0x316   : > { %4556 = vmatprep.mubr.msk.bf16.mxu1 %vm5129_vm0, %v5128_v15 }
 0x327   : > { %v1850_v27 = vpop.f32.mrb[12].mxu0 }
 0x328   : > { %v1851_v28 = vadd.f32 %v3983_v25, %v1850_v27  ;;  %v1938_v29 = vpop.f32.mrb[12].mxu1  ;;  %v4434_v30 = vpop.f32.mrb[13].mxu0 }
 0x329   : > { %v1939_v31 = vadd.f32 %v3984_v26, %v1938_v29  ;;  %v1853_v33 = vpop.f32.mrb[14].mxu0  ;;  %v4454_v34 = vpop.f32.mrb[13].mxu1 }
 0x32a   : > { %v2394_v35 = vpack.c.bf16 %v1851_v28, %v1851_v28  ;;  %v4435_v36 = vpop.f32.mrb[15].mxu0  ;;  %v1941_v37 = vpop.f32.mrb[14].mxu1 }
 0x32b   : > { %v2395_v39 = vpack.c.bf16 %v1939_v31, %v1939_v31  ;;  %v4455_v40 = vpop.f32.mrb[15].mxu1 }
 0x32c   : > { %v2493_v42 = vsel %vm2396_vm1, %v2394_v35, 0 }
 0x32d   : > { %v2539_v43 = vsel %vm2396_vm1, %v2395_v39, 0  ;;  %4549 = vmatpush3.bf16.xpose.msra.mxu0 %v2493_v42 }
 0x32e   : > { %4555 = vmatpush3.bf16.xpose.msra.mxu1 %v2539_v43  ;;  %4560 = vmatprep.subr.bf16.mxu0 %v5128_v15 }
 0x32f   : > { %4566 = vmatprep.subr.bf16.mxu1 %v5128_v15 }
 0x334   : > { %4551 = vmatmul.mubr.msk.bf16.vlgmr.msra.gmra.mrb[28].mxu0 %vm2396_vm1, %v2390_v46 }
 0x335   : > { %4557 = vmatmul.mubr.msk.bf16.vlgmr.msra.gmra.mrb[28].mxu1 %vm2396_vm1, %v2391_v47  ;;  %4562 = vmatprep.mubr.msk.bf16.mxu0 %vm5129_vm0, %v5128_v15 }
 0x336   : > { %4568 = vmatprep.mubr.msk.bf16.mxu1 %vm5129_vm0, %v5128_v15 }
 0x347   : > { %v2118_v50 = vpop.f32.mrb[16].mxu0 }
 0x348   : > { %v2119_v51 = vadd.f32 %v4017_v48, %v2118_v50  ;;  %v4474_v52 = vpop.f32.mrb[17].mxu0  ;;  %v2206_v53 = vpop.f32.mrb[16].mxu1 }
 0x349   : > { %v2121_v54 = vpop.f32.mrb[18].mxu0  ;;  %v2207_v55 = vadd.f32 %v4018_v49, %v2206_v53  ;;  %v4494_v56 = vpop.f32.mrb[17].mxu1 }
 0x34a   : > { %v2639_v57 = vpack.c.bf16 %v2119_v51, %v2119_v51  ;;  %v4475_v58 = vpop.f32.mrb[19].mxu0  ;;  %v2209_v59 = vpop.f32.mrb[18].mxu1 }
 0x34b   : > { %v2640_v60 = vpack.c.bf16 %v2207_v55, %v2207_v55  ;;  %v4495_v61 = vpop.f32.mrb[19].mxu1 }
 0x34c   : > { %v2648_v32 = vsel %vm2646_vm2, %v2639_v57, 0 }
 0x34d   : > { %v2694_v62 = vsel %vm2646_vm2, %v2640_v60, 0  ;;  %4561 = vmatpush3.bf16.msra.mxu0 %v2648_v32 }
 0x34e   : > { %4567 = vmatpush3.bf16.msra.mxu1 %v2694_v62  ;;  %4572 = vmatprep.subr.bf16.mxu0 %v5128_v15 }
 0x34f   : > { %4578 = vmatprep.subr.bf16.mxu1 %v5128_v15 }
 0x367   : > { %v2294_v1 = vpop.f32.mrb[20].mxu0 }
 0x368   : > { %v2295_v2 = vadd.f32 %v4019_v63, %v2294_v1  ;;  %v2382_v3 = vpop.f32.mrb[20].mxu1  ;;  %v4514_v4 = vpop.f32.mrb[21].mxu0 }
 0x369   : > { %v2383_v5 = vadd.f32 %v4020_v0, %v2382_v3  ;;  %v4534_v6 = vpop.f32.mrb[21].mxu1  ;;  %v2297_v7 = vpop.f32.mrb[22].mxu0 }
 0x36a   : > { %v2641_v8 = vpack.c.bf16 %v2295_v2, %v2295_v2  ;;  %v2385_v9 = vpop.f32.mrb[22].mxu1  ;;  %v4515_v10 = vpop.f32.mrb[23].mxu0 }
 0x36b   : > { %v2642_v11 = vpack.c.bf16 %v2383_v5, %v2383_v5  ;;  %v4535_v12 = vpop.f32.mrb[23].mxu1 }
 0x36c   : > { %v5831_v13 = vsel %vm2646_vm2, %v2641_v8, 0 }
 0x36d   : > { %v5834_v14 = vsel %vm2646_vm2, %v2642_v11, 0 }
 0x3e7   : > { %v2437_v16 = vpop.f32.mrb[24].mxu0 }
 0x3e8   : > { %v2581_v18 = vmul.f32 0.17677669, %v2437_v16  ;;  %v2483_v19 = vpop.f32.mrb[24].mxu1  ;;  %v4540_v20 = vpop.f32.mrb[25].mxu0 }
 0x3e9   : > { %v2582_v21 = vmul.f32 0.17677669, %v2483_v19  ;;  %v4546_v22 = vpop.f32.mrb[25].mxu1  ;;  %v2440_v23 = vpop.f32.mrb[26].mxu0  ;;  %v4850_v19 = vld [vmem:[%s6169_s22 + $0x8] sm:$0xff]   ;;  %v4851_v20 = vld [vmem:[%s6169_s22 + $0x10] sm:$0xff]  }
 0x3ea   : > { %v2486_v24 = vpop.f32.mrb[26].mxu1  ;;  %v4541_v25 = vpop.f32.mrb[27].mxu0  ;;  %v2586_v26 = vadd.f32 %v2585_v17, %v2581_v18  ;;  %v4853_v23 = vld [vmem:[%s6169_s22 + $0x20] sm:$0xff]  }
 0x3eb   : > { %v4547_v27 = vpop.f32.mrb[27].mxu1  ;;  %v2587_v29 = vadd.f32 %v2585_v17, %v2582_v21  ;;  %v4852_v21 = vld [vmem:[%s6169_s22 + $0x18] sm:$0xff]  }
 0x3ec   : > { %v2591_v28 = vsel %vm2590_vm3, %v2586_v26, -inf }
 0x3ed   : > { %2592 = vmax.xlane.f32.xlu0 %v2591_v28  ;;  %v2594_v30 = vsel %vm2590_vm3, %v2587_v29, -inf }
 0x3f1   : > { %2595 = vmax.xlane.f32.xlu0 %v2594_v30  ;;  %v4855_v30 = vld [vmem:[%s6169_s22 + $0x30] sm:$0xff]  }
 0x407   : > { %v2529_v31 = vpop.f32.mrb[28].mxu0 }
 0x408   : > { %v2583_v33 = vmul.f32 0.17677669, %v2529_v31  ;;  %v2575_v34 = vpop.f32.mrb[28].mxu1  ;;  %v4552_v35 = vpop.f32.mrb[29].mxu0 }
 0x409   : > { %v2584_v36 = vmul.f32 0.17677669, %v2575_v34  ;;  %v4558_v37 = vpop.f32.mrb[29].mxu1  ;;  %v2532_v38 = vpop.f32.mrb[30].mxu0 }
 0x40a   : > { %v2578_v39 = vpop.f32.mrb[30].mxu1  ;;  %v4553_v40 = vpop.f32.mrb[31].mxu0  ;;  %v2588_v41 = vadd.f32 %v2585_v17, %v2583_v33 }
 0x40b   : > { %v4559_v42 = vpop.f32.mrb[31].mxu1  ;;  %v2589_v44 = vadd.f32 %v2585_v17, %v2584_v36  ;;  %v4856_v36 = vld [vmem:[%s6169_s22 + $0x38] sm:$0xff]  }
 0x40c   : > { %v2597_v43 = vsel %vm2590_vm3, %v2588_v41, -inf }
 0x40d   : > { %2598 = vmax.xlane.f32.xlu1 %v2597_v43  ;;  %v2600_v45 = vsel %vm2590_vm3, %v2589_v44, -inf }
 0x411   : > { %2601 = vmax.xlane.f32.xlu1 %v2600_v45 }
 0x47a   : > { %v2593_v46 = vpop.xlane.xlu0 %2592 }
 0x47b   : > { %v2603_v47 = vsub.f32 %v2586_v26, %v2593_v46 }
 0x47d   : > { %v2607_v48 = vmul.f32 1.442695, %v2603_v47 }
 0x47e   : > { %v2596_v49 = vpop.xlane.xlu0 %2595 }
 0x47f   : > { %4897 = vpow2.f32 %v2607_v48  ;;  %v2604_v50 = vsub.f32 %v2587_v29, %v2596_v49  ;;  %v4854_v29 = vld [vmem:[%s6169_s22 + $0x28] sm:$0xff]  }
 0x481   : > { %v2609_v51 = vmul.f32 1.442695, %v2604_v50 }
 0x483   : > { %4899 = vpow2.f32 %v2609_v51 }
 0x489   : > { %v4898_v52 = vpop.eup %4897 }
 0x48a   : > { %v2615_v53 = vsel %vm2590_vm3, %v4898_v52, 0.0 }
 0x48b   : > { %2616 = vadd.xlane.f32.xlu0 %v2615_v53 }
 0x48d   : > { %v4900_v54 = vpop.eup %4899 }
 0x48e   : > { %v2618_v55 = vsel %vm2590_vm3, %v4900_v54, 0.0 }
 0x48f   : > { %2619 = vadd.xlane.f32.xlu1 %v2618_v55 }
 0x49a   : > { %v2599_v56 = vpop.xlane.xlu1 %2598 }
 0x49b   : > { %v2605_v57 = vsub.f32 %v2588_v41, %v2599_v56 }
 0x49d   : > { %v2611_v58 = vmul.f32 1.442695, %v2605_v57 }
 0x49e   : > { %v2602_v59 = vpop.xlane.xlu1 %2601 }
 0x49f   : > { %4901 = vpow2.f32 %v2611_v58  ;;  %v2606_v60 = vsub.f32 %v2589_v44, %v2602_v59 }
 0x4a1   : > { %v2613_v61 = vmul.f32 1.442695, %v2606_v60 }
 0x4a3   : > { %4903 = vpow2.f32 %v2613_v61  ;;  %v4073_v61 = vld [vmem:[%s6172_s27] ss:$0 sm:$0xff] }
 0x4a9   : > { %v4902_v32 = vpop.eup %4901 }
 0x4aa   : > { %v2621_v62 = vsel %vm2590_vm3, %v4902_v32, 0.0 }
 0x4ab   : > { %2622 = vadd.xlane.f32.xlu0 %v2621_v62 }
 0x4ad   : > { %v4904_v63 = vpop.eup %4903 }
 0x4ae   : > { %v2624_v0 = vsel %vm2590_vm3, %v4904_v63, 0.0 }
 0x4af   : > { %2625 = vadd.xlane.f32.xlu1 %v2624_v0 }
 0x518   : > { %v2617_v1 = vpop.xlane.xlu0 %2616 }
 0x519   : > { %4905 = vrcp.f32 %v2617_v1 }
 0x51c   : > { %v2620_v2 = vpop.xlane.xlu1 %2619 }
 0x51d   : > { %4907 = vrcp.f32 %v2620_v2  ;;  %v4925_v2 = vld [vmem:[#allocation2] sm:$0xff] }
 0x523   : > { %v4906_v3 = vpop.eup %4905 }
 0x524   : > { %v2628_v4 = vmul.f32 %v4906_v3, %v4898_v52 }
 0x526   : > { %v2635_v5 = vpack.c.bf16 %v2628_v4, %v2628_v4  ;;  %v4857_v4 = vld [vmem:[%s6170_s18] ss:$8 sps:$4 sm:$0xff]  }
 0x527   : > { %v4908_v6 = vpop.eup %4907 }
 0x528   : > { %v2630_v7 = vmul.f32 %v4908_v6, %v4900_v54  ;;  %4563 = vmatmul.mubr.msk.bf16.vlgmr.msra.gmra.mrb[32].mxu0 %vm2590_vm3, %v2635_v5  ;;  %v4859_v5 = vld [vmem:[%s6170_s18 + $0x4] ss:$8 sps:$4 sm:$0xff]   ;;  %v4862_v6 = vld [vmem:[%s6170_s18 + $0x14] ss:$8 sps:$4 sm:$0xff]  }
 0x529   : > { %4573 = vmatpush3.bf16.msra.mxu0 %v5831_v13  ;;  %4574 = vmatprep.mubr.msk.bf16.mxu0 %vm5129_vm0, %v5128_v15  ;;  %v4849_v13 = vld [vmem:[%s6169_s22] sm:$0xff]   ;;  %s6180_s22 = sld [smem:[#allocation50_spill]] (!%p4111_p1) }
 0x52a   : > { %v2636_v8 = vpack.c.bf16 %v2630_v7, %v2630_v7  ;;  %4584 = vmatprep.subr.bf16.mxu0 %v5128_v15  ;;  %v4860_v7 = vld [vmem:[%s6170_s18 + $0x10] ss:$8 sps:$4 sm:$0xff]  }
 0x52c   : > { %4569 = vmatmul.mubr.msk.bf16.vlgmr.msra.gmra.mrb[32].mxu1 %vm2590_vm3, %v2636_v8  ;;  %v4865_v8 = vld [vmem:[%s6170_s18 + $0x24] ss:$8 sps:$4 sm:$0xff]  }
 0x52d   : > { %4579 = vmatpush3.bf16.msra.mxu1 %v5834_v14  ;;  %4580 = vmatprep.mubr.msk.bf16.mxu1 %vm5129_vm0, %v5128_v15 }
 0x52e   : > { %4592 = vmatprep.subr.bf16.mxu1 %v5128_v15 }
 0x538   : > { %v2623_v9 = vpop.xlane.xlu0 %2622 }
 0x539   : > { %4909 = vrcp.f32 %v2623_v9  ;;  %v4863_v9 = vld [vmem:[%s6170_s18 + $0x20] ss:$8 sps:$4 sm:$0xff]  }
 0x53c   : > { %v2626_v10 = vpop.xlane.xlu1 %2625 }
 0x53d   : > { %4911 = vrcp.f32 %v2626_v10 }
 0x543   : > { %v4910_v11 = vpop.eup %4909 }
 0x544   : > { %v2632_v12 = vmul.f32 %v4910_v11, %v4902_v32 }
 0x546   : > { %v2637_v16 = vpack.c.bf16 %v2632_v12, %v2632_v12 }
 0x547   : > { %v4912_v17 = vpop.eup %4911 }
 0x548   : > { %v2634_v18 = vmul.f32 %v4912_v17, %v4904_v63  ;;  %4575 = vmatmul.mubr.msk.bf16.vlgmr.msra.gmra.mrb[36].mxu0 %vm2590_vm3, %v2637_v16  ;;  %v4868_v16 = vld [vmem:[%s6170_s18 + $0x34] ss:$8 sps:$4 sm:$0xff]   ;;  %v4866_v17 = vld [vmem:[%s6170_s18 + $0x30] ss:$8 sps:$4 sm:$0xff]  }
 0x549   : > { %4585 = vmatpush3.bf16.msra.mxu0 %v4849_v13  ;;  %4588 = vmatprep.mubr.msk.bf16.mxu0 %vm5129_vm0, %v5128_v15 }
 0x54a   : > { %v2638_v14 = vpack.c.bf16 %v2634_v18, %v2634_v18  ;;  %4586 = vmatprep.subr.bf16.mxu0 %v5128_v15  ;;  %v4871_v18 = vld [vmem:[%s6170_s18 + $0x44] ss:$8 sps:$4 sm:$0xff]  }
 0x54c   : > { %4581 = vmatmul.mubr.msk.bf16.vlgmr.msra.gmra.mrb[36].mxu1 %vm2590_vm3, %v2638_v14  ;;  %v4869_v14 = vld [vmem:[%s6170_s18 + $0x40] ss:$8 sps:$4 sm:$0xff]  }
 0x54d   : > { %4596 = vmatprep.mubr.msk.bf16.mxu1 %vm5129_vm0, %v5128_v15  ;;  %4587 = vmatpush3.bf16.msra.mxu0 %v4850_v19  ;;  %v4874_v19 = vld [vmem:[%s6170_s18 + $0x54] ss:$8 sps:$4 sm:$0xff]  }
 0x54e   : > { %4593 = vmatpush3.bf16.msra.mxu1 %v4851_v20  ;;  %4600 = vmatprep.subr.bf16.mxu0 %v5128_v15  ;;  %v4872_v20 = vld [vmem:[%s6170_s18 + $0x50] ss:$8 sps:$4 sm:$0xff]  }
 0x54f   : > { %4594 = vmatprep.subr.bf16.mxu1 %v5128_v15 }
 0x552   : > { %4595 = vmatpush3.bf16.msra.mxu1 %v4852_v21  ;;  %v4877_v21 = vld [vmem:[%s6170_s18 + $0x64] ss:$8 sps:$4 sm:$0xff]  }
 0x553   : > { %4608 = vmatprep.subr.bf16.mxu1 %v5128_v15 }
 0x5fb   : > { %v2684_v22 = vpop.f32.mrb[32].mxu0 }
 0x5fc   : > { %v2828_v24 = vpack.c.bf16 %v2684_v22, %v2684_v22  ;;  %v4564_v25 = vpop.f32.mrb[33].mxu0  ;;  %v4875_v22 = vld [vmem:[%s6170_s18 + $0x60] ss:$8 sps:$4 sm:$0xff]  }
 0x5fd   : > { %v2687_v26 = vpop.f32.mrb[34].mxu0  ;;  %v5130_v25 = vmov 0  }
 0x5fe   : > { %v4565_v27 = vpop.f32.mrb[35].mxu0  ;;  %4589 = vmatmul.mubr.msk.bf16.vlgmr.msra.gmra.mrb[40].mxu0 %vm2396_vm1, %v2828_v24  ;;  %v4878_v24 = vld [vmem:[%s6170_s18 + $0x70] ss:$8 sps:$4 sm:$0xff]  }
 0x5ff   : > { %v2730_v28 = vpop.f32.mrb[32].mxu1  ;;  %4601 = vmatpush3.bf16.msra.mxu0 %v4853_v23  ;;  %4604 = vmatprep.mubr.msk.bf16.mxu0 %vm5129_vm0, %v5128_v15  ;;  %v4880_v23 = vld [vmem:[%s6170_s18 + $0x74] ss:$8 sps:$4 sm:$0xff]  }
 0x600   : > { %v2829_v31 = vpack.c.bf16 %v2730_v28, %v2730_v28  ;;  %v4570_v33 = vpop.f32.mrb[33].mxu1  ;;  %4602 = vmatprep.subr.bf16.mxu0 %v5128_v15 }
 0x601   : > { %v2733_v34 = vpop.f32.mrb[34].mxu1  ;;  %v4075_v33 = vld [vmem:[%s6176_s1] ss:$0 sm:$0xff]  ;;  %s6181_s1 = sld [smem:[#allocation51_spill]] (!%p4111_p1) }
 0x602   : > { %v4571_v35 = vpop.f32.mrb[35].mxu1  ;;  %4597 = vmatmul.mubr.msk.bf16.vlgmr.msra.gmra.mrb[40].mxu1 %vm2396_vm1, %v2829_v31 }
 0x603   : > { %4603 = vmatpush3.bf16.msra.mxu0 %v4854_v29  ;;  %4609 = vmatpush3.bf16.msra.mxu1 %v4855_v30  ;;  %v4074_v30 = vld [vmem:[%s6174_s17] ss:$0 sm:$0xff] }
 0x604   : > { %4610 = vmatprep.subr.bf16.mxu1 %v5128_v15  ;;  %4612 = vmatprep.mubr.msk.bf16.mxu1 %vm5129_vm0, %v5128_v15 }
 0x605   : > { %3217 = vmatprep.subr.bf16.mxu0 %v4859_v5 }
 0x607   : > { %4611 = vmatpush3.bf16.msra.mxu1 %v4856_v36 }
 0x61b   : > { %v2776_v37 = vpop.f32.mrb[36].mxu0 }
 0x61c   : > { %v2830_v38 = vpack.c.bf16 %v2776_v37, %v2776_v37  ;;  %v4576_v39 = vpop.f32.mrb[37].mxu0  ;;  %v4881_v37 = vld [vmem:[%s5533_s0 + $0x40] sm:$0xff]  }
 0x61d   : > { %v2779_v40 = vpop.f32.mrb[38].mxu0  ;;  %4265 = vmatprep.subr.bf16.mxu1 %v4881_v37  ;;  %v4883_v39 = vld [vmem:[%s5533_s0 + $0x48] sm:$0xff]  }
 0x61e   : > { %v4577_v41 = vpop.f32.mrb[39].mxu0  ;;  %4605 = vmatmul.mubr.msk.bf16.vlgmr.msra.gmra.mrb[44].mxu0 %vm2396_vm1, %v2830_v38  ;;  %v4882_v38 = vld [vmem:[%s5533_s0] sm:$0xff]   ;;  %v4884_v40 = vld [vmem:[%s5533_s0 + $0x8] sm:$0xff]  }
 0x61f   : > { %v2822_v42 = vpop.f32.mrb[36].mxu1  ;;  %3218 = vmatpush1.bf16.msra.mxu0 %v4857_v4  ;;  %3249 = vmatprep.mubr.bf16.mxu0 %v5130_v25  ;;  %v4885_v41 = vld [vmem:[%s5533_s0 + $0x50] sm:$0xff]  }
 0x620   : > { %v2831_v43 = vpack.c.bf16 %v2822_v42, %v2822_v42  ;;  %v4582_v44 = vpop.f32.mrb[37].mxu1  ;;  %3219 = vmatprep.subr.bf16.mxu0 %v4862_v6  ;;  %v4886_v42 = vld [vmem:[%s5533_s0 + $0x10] sm:$0xff]  }
 0x621   : > { %v2825_v45 = vpop.f32.mrb[38].mxu1  ;;  %v4888_v44 = vld [vmem:[%s5533_s0 + $0x18] sm:$0xff]  }
 0x622   : > { %v4583_v46 = vpop.f32.mrb[39].mxu1  ;;  %4613 = vmatmul.mubr.msk.bf16.vlgmr.msra.gmra.mrb[44].mxu1 %vm2396_vm1, %v2831_v43  ;;  %v4887_v43 = vld [vmem:[%s5533_s0 + $0x58] sm:$0xff]   ;;  %v4889_v45 = vld [vmem:[%s5533_s0 + $0x60] sm:$0xff]  }
 0x623   : > { %3220 = vmatpush1.bf16.msra.mxu0 %v4860_v7  ;;  %4266 = vmatpush3.bf16.msra.mxu1 %v4882_v38  ;;  %v4890_v46 = vld [vmem:[%s5533_s0 + $0x20] sm:$0xff]  }
 0x624   : > { %3221 = vmatprep.subr.bf16.mxu0 %v4865_v8  ;;  %4267 = vmatprep.subr.bf16.mxu1 %v4883_v39 }
 0x627   : > { %3222 = vmatpush1.bf16.msra.mxu0 %v4863_v9  ;;  %4268 = vmatpush3.bf16.msra.mxu1 %v4884_v40 }
 0x628   : > { %3223 = vmatprep.subr.bf16.mxu0 %v4868_v16  ;;  %4269 = vmatprep.subr.bf16.mxu1 %v4885_v41 }
 0x62b   : > { %3224 = vmatpush1.bf16.msra.mxu0 %v4866_v17  ;;  %4270 = vmatpush3.bf16.msra.mxu1 %v4886_v42  ;;  %v5131_v42 = vmov -1.0  }
 0x62c   : > { %3225 = vmatprep.subr.bf16.mxu0 %v4871_v18  ;;  %4271 = vmatprep.subr.bf16.mxu1 %v4887_v43 }
 0x62f   : > { %3226 = vmatpush1.bf16.msra.mxu0 %v4869_v14  ;;  %4272 = vmatpush3.bf16.msra.mxu1 %v4888_v44 }
 0x630   : > { %3227 = vmatprep.subr.bf16.mxu0 %v4874_v19  ;;  %4273 = vmatprep.subr.bf16.mxu1 %v4889_v45 }
 0x633   : > { %3228 = vmatpush1.bf16.msra.mxu0 %v4872_v20  ;;  %4274 = vmatpush3.bf16.msra.mxu1 %v4890_v46 }
 0x634   : > { %3229 = vmatprep.subr.bf16.mxu0 %v4877_v21 }
 0x637   : > { %3230 = vmatpush1.bf16.msra.mxu0 %v4875_v22 }
 0x638   : > { %3231 = vmatprep.subr.bf16.mxu0 %v4880_v23 }
 0x63b   : > { %3232 = vmatpush1.bf16.msra.mxu0 %v4878_v24 }
 0x6d1   : > { %v2897_v47 = vpop.f32.mrb[40].mxu0 }
 0x6d2   : > { %v4590_v48 = vpop.f32.mrb[41].mxu0 }
 0x6d3   : > { %v2900_v49 = vpop.f32.mrb[42].mxu0  ;;  %v4892_v48 = vld [vmem:[%s5533_s0 + $0x28] sm:$0xff]  }
 0x6d4   : > { %v4591_v15 = vpop.f32.mrb[43].mxu0  ;;  %v4893_v49 = vld [vmem:[%s5533_s0 + $0x70] sm:$0xff]  }
 0x6d5   : > { %v2952_v50 = vpop.f32.mrb[40].mxu1  ;;  %v4894_v15 = vld [vmem:[%s5533_s0 + $0x30] sm:$0xff]  }
 0x6d6   : > { %v3068_v51 = vadd.f32 %v2952_v50, %v2897_v47  ;;  %v4598_v52 = vpop.f32.mrb[41].mxu1  ;;  %v4891_v47 = vld [vmem:[%s5533_s0 + $0x68] sm:$0xff]   ;;  %v4895_v50 = vld [vmem:[%s5533_s0 + $0x78] sm:$0xff]  }
 0x6d7   : > { %v2955_v53 = vpop.f32.mrb[42].mxu1  ;;  %4275 = vmatprep.subr.bf16.mxu1 %v4891_v47  ;;  %v3127_v52 = vlaneseq }
 0x6d8   : > { %v4599_v54 = vpop.f32.mrb[43].mxu1  ;;  %4276 = vmatpush3.bf16.msra.mxu1 %v4892_v48 }
 0x6d9   : > { %4277 = vmatprep.subr.bf16.mxu1 %v4893_v49  ;;  %v3128_v53 = vshrl.u32 %v3127_v52, 7 }
 0x6db   : > { %v3129_v54 = vsub.s32 0, %v3128_v53 }
 0x6dc   : > { %4278 = vmatpush3.bf16.msra.mxu1 %v4894_v15 }
 0x6dd   : > { %4279 = vmatprep.subr.bf16.mxu1 %v4895_v50 }
 0x6f1   : > { %v3007_v55 = vpop.f32.mrb[44].mxu0 }
 0x6f2   : > { %v3069_v56 = vadd.f32 %v3068_v51, %v3007_v55  ;;  %v4606_v57 = vpop.f32.mrb[45].mxu0  ;;  %v4896_v51 = vld [vmem:[%s5533_s0 + $0x38] sm:$0xff]   ;;  %v3125_v55 = vld [vmem:[%s5528_s19] sm:$0x3] }
 0x6f3   : > { %v3010_v58 = vpop.f32.mrb[46].mxu0  ;;  %4280 = vmatpush3.bf16.msra.mxu1 %v4896_v51  ;;  %v3130_v57 = vrot.slane %v3125_v55, %v3129_v54 }
 0x6f4   : > { %v4607_v59 = vpop.f32.mrb[47].mxu0 }
 0x6f5   : > { %v3062_v60 = vpop.f32.mrb[44].mxu1 }
 0x6f6   : > { %v3070_v32 = vadd.f32 %v3069_v56, %v3062_v60  ;;  %v4614_v62 = vpop.f32.mrb[45].mxu1  ;;  %v3133_v56 = vsub.s32 1, %v3128_v53 }
 0x6f7   : > { %v3065_v63 = vpop.f32.mrb[46].mxu1 }
 0x6f8   : > { %v3078_v0 = vadd.f32 %v4073_v61, %v3070_v32  ;;  %v4615_v1 = vpop.f32.mrb[47].mxu1  ;;  %v3134_v58 = vrot.slane %v3125_v55, %v3133_v56  ;;  %v4092_v56 = vld [vmem:[%s1012_s25] ss:$0 sm:$0xff] }
 0x6fa   : > { %v3079_v3 = vadd.f32 %v4925_v2, %v3078_v0 }
 0x6fc   : > { %3082 = vadd.xlane.f32.xlu0 %v3079_v3 }
 0x789   : > { %v3083_v10 = vpop.xlane.xlu0 %3082 }
 0x78a   : > { %v3085_v11 = vmul.f32 0.0078125, %v3083_v10 }
 0x78c   : > { %v3086_v12 = vsub.f32 %v3079_v3, %v3085_v11 }
 0x78e   : > { %v3087_v13 = vmul.f32 %v3086_v12, %v3086_v12 }
 0x790   : > { %3088 = vadd.xlane.f32.xlu1 %v3087_v13 }
 0x81d   : > { %v3089_v26 = vpop.xlane.xlu1 %3088 }
 0x81e   : > { %v3090_v27 = vmul.f32 0.0078125, %v3089_v26 }
 0x820   : > { %v3091_v28 = vadd.f32 1e-12, %v3090_v27 }
 0x822   : > { %4913 = vrsqrt.f32 %v3091_v28 }
 0x82c   : > { %v4914_v29 = vpop.eup %4913 }
 0x82d   : > { %v3093_v31 = vmul.f32 %v4914_v29, %v3086_v12 }
 0x82f   : > { %v3100_v34 = vmul.f32 %v4074_v30, %v3093_v31 }
 0x831   : > { %v5914_v35 = vadd.f32 %v4075_v33, %v3100_v34 }
 0x833   : > { %v3108_v36 = vpack.c.bf16 %v5914_v35, %v5914_v35 }
 0x835   : > { %3250 = vmatmul.mubr.bf16.vlgmr.msra.gmra.mrb[48].mxu0 %v3108_v36 }
 0x908   : > { %v3251_v59 = vpop.f32.mrb[48].mxu0 }
 0x909   : > { %v3252_v60 = vadd.f32 %v3251_v59, %v3130_v57  ;;  %v3253_v61 = vpop.f32.mrb[49].mxu0 }
 0x90a   : > { %v3254_v32 = vadd.f32 %v3253_v61, %v3134_v58  ;;  %v3255_v62 = vpop.f32.mrb[50].mxu0 }
 0x90b   : > { %v3260_v63 = vmul.f32 0.70710677, %v3252_v60  ;;  %v3256_v0 = vpop.f32.mrb[51].mxu0  ;;  %v3258_v48 = vmul.f32 0.5, %v3252_v60 }
 0x90c   : > { %v3261_v1 = vmul.f32 0.70710677, %v3254_v32  ;;  %v3259_v15 = vmul.f32 0.5, %v3254_v32 }
 0x90d   : > { %v3266_v2 = vand.u32 2147483647, %v3260_v63  ;;  %vm3262_vm4 = vcmp.ge.f32.partialorder %v3260_v63, 0.0 }
 0x90e   : > { %v3267_v3 = vand.u32 2147483647, %v3261_v1  ;;  %vm3263_vm5 = vcmp.ge.f32.partialorder %v3261_v1, 0.0  ;;  %v3264_v43 = vsel %vm3262_vm4, 1.0, %v5131_v42 }
 0x90f   : > { %v3268_v4 = vmul.f32 0.3275911, %v3266_v2  ;;  %v3292_v8 = vsub.f32 0.0, %v3266_v2  ;;  %v3265_v46 = vsel %vm3263_vm5, 1.0, %v5131_v42 }
 0x910   : > { %v3269_v5 = vmul.f32 0.3275911, %v3267_v3  ;;  %v3293_v9 = vsub.f32 0.0, %v3267_v3 }
 0x911   : > { %v3270_v6 = vadd.f32 1.0, %v3268_v4  ;;  %v3294_v11 = vmul.f32 %v3292_v8, %v3266_v2 }
 0x912   : > { %v3271_v7 = vadd.f32 1.0, %v3269_v5  ;;  %v3295_v16 = vmul.f32 %v3293_v9, %v3267_v3 }
 0x913   : > { %4915 = vrcp.f32 %v3270_v6  ;;  %v3296_v14 = vmul.f32 1.442695, %v3294_v11  ;;  %v4109_v6 = vld [vmem:[%s1015_s21] ss:$0 sm:$0xff]  ;;  %v5132_v11 = vmov (!%p4111_p1), 0.0  }
 0x914   : > { %4917 = vrcp.f32 %v3271_v7  ;;  %v3298_v21 = vmul.f32 1.442695, %v3295_v16  ;;  %4616 = vmatprep.subr.bf16.mxu0 (!%p4111_p1), %v5132_v11  ;;  %4632 = vmatprep.mubr.msk.bf16.mxu0 (!%p4111_p1), %vm5133_vm6, %v5132_v11  ;;  %v4929_v16 = vld [vmem:[%s6180_s22 + $0x18] sm:$0xff] (!%p4111_p1)  }
 0x915   : > { %4919 = vpow2.f32 %v3296_v14  ;;  %v4932_v14 = vld [vmem:[%s6180_s22 + $0x30] sm:$0xff] (!%p4111_p1)  }
 0x916   : > { %4921 = vpow2.f32 %v3298_v21  ;;  %v3537_v21 = vld [vmem:[%s6181_s1] sm:$0x1] (!%p4111_p1) }
 0x91d   : > { %v4916_v10 = vpop.eup %4915 }
 0x91e   : > { %v4918_v12 = vpop.eup %4917  ;;  %v3274_v13 = vmul.f32 1.0614054, %v4916_v10 }
 0x91f   : > { %v3275_v17 = vmul.f32 1.0614054, %v4918_v12  ;;  %v4920_v36 = vpop.eup %4919 }
 0x920   : > { %v3276_v18 = vadd.f32 -1.4531521, %v3274_v13  ;;  %v4922_v38 = vpop.eup %4921  ;;  %v4928_v13 = vld [vmem:[%s6180_s22 + $0x10] sm:$0xff] (!%p4111_p1)  }
 0x921   : > { %v3277_v19 = vadd.f32 -1.4531521, %v3275_v17  ;;  %v4930_v17 = vld [vmem:[%s6180_s22 + $0x20] sm:$0xff] (!%p4111_p1)  }
 0x922   : > { %v3278_v20 = vmul.f32 %v4916_v10, %v3276_v18  ;;  %v4931_v18 = vld [vmem:[%s6180_s22 + $0x28] sm:$0xff] (!%p4111_p1)  }
 0x923   : > { %v3279_v22 = vmul.f32 %v4918_v12, %v3277_v19  ;;  %v4933_v19 = vld [vmem:[%s6180_s22 + $0x38] sm:$0xff] (!%p4111_p1)  }
 0x924   : > { %v3280_v23 = vadd.f32 1.4214138, %v3278_v20 }
 0x925   : > { %v3281_v24 = vadd.f32 1.4214138, %v3279_v22 }
 0x926   : > { %v3282_v25 = vmul.f32 %v4916_v10, %v3280_v23 }
 0x927   : > { %v3283_v26 = vmul.f32 %v4918_v12, %v3281_v24 }
 0x928   : > { %v3284_v27 = vadd.f32 -0.28449672, %v3282_v25 }
 0x929   : > { %v3285_v28 = vadd.f32 -0.28449672, %v3283_v26 }
 0x92a   : > { %v3286_v29 = vmul.f32 %v4916_v10, %v3284_v27 }
 0x92b   : > { %v3287_v30 = vmul.f32 %v4918_v12, %v3285_v28 }
 0x92c   : > { %v3288_v31 = vadd.f32 0.2548296, %v3286_v29 }
 0x92d   : > { %v3289_v33 = vadd.f32 0.2548296, %v3287_v30 }
 0x92e   : > { %v3290_v34 = vmul.f32 %v4916_v10, %v3288_v31  ;;  %v4926_v10 = vld [vmem:[%s6180_s22] sm:$0xff] (!%p4111_p1)  }
 0x92f   : > { %v3291_v37 = vmul.f32 %v4918_v12, %v3289_v33  ;;  %4617 = vmatpush3.bf16.msra.mxu0 (!%p4111_p1), %v4926_v10  ;;  %v4927_v12 = vld [vmem:[%s6180_s22 + $0x8] sm:$0xff] (!%p4111_p1)  }
 0x930   : > { %v3300_v39 = vmul.f32 %v4920_v36, %v3290_v34  ;;  %4618 = vmatprep.subr.bf16.mxu0 (!%p4111_p1), %v5132_v11 }
 0x931   : > { %v3301_v40 = vmul.f32 %v4922_v38, %v3291_v37 }
 0x932   : > { %v3302_v41 = vsub.f32 1.0, %v3300_v39 }
 0x933   : > { %v3303_v44 = vsub.f32 1.0, %v3301_v40  ;;  %4619 = vmatpush3.bf16.msra.mxu0 (!%p4111_p1), %v4927_v12 }
 0x934   : > { %v3304_v45 = vmul.f32 %v3302_v41, %v3264_v43  ;;  %4620 = vmatprep.subr.bf16.mxu0 (!%p4111_p1), %v5132_v11 }
 0x935   : > { %v3305_v47 = vmul.f32 %v3303_v44, %v3265_v46 }
 0x936   : > { %v3306_v49 = vadd.f32 1.0, %v3304_v45 }
 0x937   : > { %v3307_v50 = vadd.f32 1.0, %v3305_v47  ;;  %4621 = vmatpush3.bf16.msra.mxu0 (!%p4111_p1), %v4928_v13 }
 0x938   : > { %v3308_v51 = vmul.f32 %v3306_v49, %v3258_v48  ;;  %4622 = vmatprep.subr.bf16.mxu0 (!%p4111_p1), %v5132_v11 }
 0x939   : > { %v3309_v52 = vmul.f32 %v3307_v50, %v3259_v15 }
 0x93a   : > { %v3310_v54 = vpack.c.bf16 %v3308_v51, %v3308_v51 }
 0x93b   : > { %v3311_v53 = vpack.c.bf16 %v3309_v52, %v3309_v52  ;;  %4623 = vmatpush3.bf16.msra.mxu0 (!%p4111_p1), %v4929_v16 }
 0x93c   : > { %4624 = vmatprep.subr.bf16.mxu0 (!%p4111_p1), %v5132_v11 }
 0x93d   : > { %3479 = vmatprep.mubr.bf16.mxu1 %v3311_v53 }
 0x93e   : > { %3480 = vmatmul.mubr.bf16.vlgmr.msra.gmra.mrb[48].mxu1 %v3310_v54 }
 0x93f   : > { %4625 = vmatpush3.bf16.msra.mxu0 (!%p4111_p1), %v4930_v17 }
 0x940   : > { %4626 = vmatprep.subr.bf16.mxu0 (!%p4111_p1), %v5132_v11 }
 0x943   : > { %4627 = vmatpush3.bf16.msra.mxu0 (!%p4111_p1), %v4931_v18 }
 0x944   : > { %4628 = vmatprep.subr.bf16.mxu0 (!%p4111_p1), %v5132_v11 }
 0x947   : > { %4629 = vmatpush3.bf16.msra.mxu0 (!%p4111_p1), %v4932_v14 }
 0x948   : > { %4630 = vmatprep.subr.bf16.mxu0 (!%p4111_p1), %v5132_v11 }
 0x94b   : > { %4631 = vmatpush3.bf16.msra.mxu0 (!%p4111_p1), %v4933_v19 }
 0xa11   : > { %v4281_v55 = vpop.f32.mrb[48].mxu1 }
 0xa12   : > { %v4282_v57 = vpop.f32.mrb[49].mxu1 }
 0xa13   : > { %v4283_v58 = vadd.f32 %v4282_v57, %v4281_v55  ;;  %v4284_v59 = vpop.f32.mrb[50].mxu1 }
 0xa14   : > { %v4285_v60 = vpop.f32.mrb[51].mxu1 }
 0xa15   : > { %v3482_v61 = vadd.f32 %v4283_v58, %v4092_v56 }
 0xa17   : > { %v3487_v32 = vadd.f32 %v3482_v61, %v5914_v35  ;;  %v4110_v35 = vld [vmem:[%s1018_s7] ss:$0 sm:$0xff] }
 0xa19   : > { %3490 = vadd.xlane.f32.xlu0 %v3487_v32 }
 0xaa6   : > { %v3491_v62 = vpop.xlane.xlu0 %3490 }
 0xaa7   : > { %v3492_v63 = vmul.f32 0.0078125, %v3491_v62 }
 0xaa9   : > { %v3493_v0 = vsub.f32 %v3487_v32, %v3492_v63 }
 0xaab   : > { %v3494_v1 = vmul.f32 %v3493_v0, %v3493_v0 }
 0xaad   : > { %3495 = vadd.xlane.f32.xlu1 %v3494_v1 }
 0xb3a   : > { %v3496_v2 = vpop.xlane.xlu1 %3495 }
 0xb3b   : > { %v3497_v3 = vmul.f32 0.0078125, %v3496_v2 }
 0xb3d   : > { %v3498_v4 = vadd.f32 1e-12, %v3497_v3 }
 0xb3f   : > { %4923 = vrsqrt.f32 %v3498_v4 }
 0xb49   : > { %v4924_v5 = vpop.eup %4923 }
 0xb4a   : > { %v3500_v7 = vmul.f32 %v4924_v5, %v3493_v0  ;;  %3519 = sbr.rel (%p4111_p1) target bundleno = 3124 (0xc34), region = 124 }
 0xb4c   : > { %v3507_v8 = vmul.f32 %v4109_v6, %v3500_v7 }
 0xb4e   : > { %v3514_v9 = vadd.f32 %v4110_v35, %v3507_v8 }
 0xb50   : > { %3515 = vst [vmem:[#allocation2] sm:$0xff] %v3514_v9  ;;  %v3520_v20 = vpack.c.bf16 (!%p4111_p1), %v3514_v9, %v3514_v9 }
 0xb52   : > { %4633 = vmatmul.mubr.bf16.vlgmr.msra.gmra.mrb[0].mxu0 %v3520_v20 }
 0xc25   : > { %v3620_v22 = vpop.f32.mrb[0].mxu0 }
 0xc26   : > { %v3621_v23 = vadd.f32 %v3620_v22, %v3537_v21  ;;  %v4634_v24 = vpop.f32.mrb[1].mxu0 }
 0xc27   : > { %v3623_v25 = vpop.f32.mrb[2].mxu0 }
 0xc28   : > { %4934 = vtanh.f32 %v3621_v23  ;;  %v4635_v26 = vpop.f32.mrb[3].mxu0 }
 0xc32   : > { %v4935_v27 = vpop.eup %4934 }
 0xc33   : > { %3627 = vst [vmem:[%s5549_s5] sm:$0x1] %v4935_v27 }
 0xc34 PF: > { %s6182_s19 = sld [smem:[#allocation16_spill]]  ;;  %s6183_s0 = sld [smem:[#allocation24_spill]] }
 0xc35   : > { %s6184_s12 = sld [smem:[#allocation52_spill]]  ;;  %s3641_s14 = sshll.u32 %s5549_s5, 4  ;;  %s3642_s14 = int_to_ptr.vmem [resolvable:$true] %s3641_s14 }
 0xc36   : > { %s6185_s26 = sand.u32 1, %s5086_s28   ;;  %s4996_s4 = scalar_lea.vmem %s3642_s14, 16 }
 0xc37   : > { %s3629_s16 = scalar_lea.sflag [#allocation5], %s6185_s26  ;;  %p4997_p10 = scmp.ne.s32.totalorder %s3642_s14, %s4996_s4 }
 0xc38   : > { %s5134_s21 = smov [#allocation8]  }
 0xc39   : > { %s5000_s18 = sshll.u32 %s5134_s21, 4  ;;  %s5001_s18 = int_to_ptr.vmem [resolvable:$false] %s5000_s18 }
 0xc3a   : > { %s4120_s10 = sshll.u32 %s6182_s19, 4  ;;  %p6186_p11 = scmp.ne.s32.totalorder %s6183_s0, 0 }
 0xc3b   : > { %s5984_s13 = scalar_lea.hbm %s6184_s12, %s4120_s10  ;;  %s5002_s7 = scalar_lea.vmem %s5001_s18, 32 }
 0xc3c   : > { %p4998_p12 = pnand %p4997_p10, %p6186_p11  ;;  %p5003_p13 = scmp.lt.s32.totalorder %s3642_s14, %s5001_s18 }
 0xc3d   : > { %p5004_p0 = scmp.lt.s32.totalorder %s5002_s7, %s4996_s4 }
 0xc3e   : > { %p4999_p2 = pneg %p4998_p12 }
 0xc3f   : > { %p5005_p5 = por %p5004_p0, %p5003_p13 }
 0xc41   : > { %p5006_p7 = pnand %p5005_p5, %p4999_p2 }
 0xc43   : > { %5009 = shalt.err (!%p5006_p7)
}
 0xc44   : > { %s5010_s5 = scalar_lea.hbm %s5984_s13, 16  ;;  %s5014_s20 = scalar_lea.hbm %s6184_s12, 32 }
 0xc45   : > { %p5011_p3 = scmp.ne.s32.totalorder %s5984_s13, %s5010_s5  ;;  %p5015_p6 = scmp.lt.u32.totalorder %s5984_s13, %s6184_s12 }
 0xc46   : > { %p5016_p9 = scmp.lt.u32.totalorder %s5014_s20, %s5010_s5  ;;  %p5018_p10 = scmp.lt.u32.totalorder %s5010_s5, %s5984_s13 }
 0xc47   : > { %p5012_p8 = pnand %p5011_p3, %p6186_p11 }
 0xc48   : > { %p5017_p1 = por %p5016_p9, %p5015_p6 }
 0xc49   : > { %p5013_p4 = pneg %p5012_p8 }
 0xc4a   : > { %p5019_p12 = por %p5018_p10, %p5017_p1 }
 0xc4c   : > { %p5020_p2 = pnand %p5019_p12, %p5013_p4 }
 0xc4e   : > { %5023 = shalt.err (!%p5020_p2)
}
 0xc4f   : > { %4640 = dma.vmem_to_hbm [thread:$0]  (%p6186_p11), %s3642_s14, 16, %s5984_s13, %s3629_s16  }
 0xc50 PF: > { %s6187_s27 = sld [smem:[#allocation19_spill]]  ;;  %s6188_s15 = sld [smem:[#allocation12_spill]] }
 0xc51   : > { %s6189_s6 = sld [smem:[#allocation25_spill]] }
 0xc56   : > { %p4654_p13 = scmp.ge.s32.totalorder %s6187_s27, 2  ;;  %s3653_s3 = sand.u32 1, %s6188_s15  }
 0xc57   : > { %p6190_p0 = scmp.ne.s32.totalorder %s6189_s6, 0  ;;  %s3654_s17 = scalar_lea.sflag [#allocation5], %s3653_s3 }
 0xc59   : > { %p4650_p5 = pnand %p4654_p13, %p6190_p0 }
 0xc5b   : > { %5077 = dma.done.wait (!%p4650_p5), %s3654_s17, 16  }
 0xc5c   : > { %5079 = vsyncadd (!%p4650_p5), %s3654_s17, 4294967280  ;;  %s41_s6 = sadd.s32 1, %s6187_s27   ;;  %s6191_s8 = sld [smem:[#allocation13_spill]] }
 0xc5d   : > { %p38_p7 = scmp.ge.s32.totalorder %s41_s6, 6   ;;  %s6192_s29 = sld [smem:[#allocation23_spill]] }
 0xc5e   : > { %s6193_s30 = sld [smem:[#allocation14_spill]]  ;;  %s6194_s4 = sld [smem:[#allocation15_spill]] }
 0xc5f   : > { %s6195_s0 = sld [smem:[#allocation22_spill]]  ;;  %s6196_s23 = sld [smem:[#allocation17_spill]] }
 0xc60   : > { %s6197_s1 = sld [smem:[#allocation18_spill]]  ;;  %s6198_s5 = sld [smem:[#allocation20_spill]] }
 0xc61   : > { %s6199_s24 = sld [smem:[#allocation21_spill]]  ;;  %s6200_s3 = smov %s5086_s28 }
 0xc62   : > { %s6201_s28 = smov %s6191_s8  ;;  %40 = sbr.rel (!%p38_p7) target bundleno = 35 (0x23), region = 222 }
 0xc69   :  { %3658 = vsyncpa [#allocation4], 1 }
 0xc6a   :  { %3660 = vsyncpa [#allocation4 + $0x1], 1 }
 0xc6b   :  { %3661 = vsyncpa [#allocation7], 1 }
 0xc6c   :  { %3663 = vsyncpa [#allocation7 + $0x1], 1 }
 0xc6d   :  { %3664 = vsyncpa [#allocation5], 1 }
 0xc6e   :  { %3666 = vsyncpa [#allocation5 + $0x1], 1 }

</bundles_post_ra>
